<compile_context>
chip_gen: v5e
topology: v5e:2x2
jax: 0.10.0
libtpu: 0.0.40
codegen_flags: <defaults>
</compile_context>

<pallas_src>
import functools

import jax
import jax.numpy as jnp
from jax import lax
from jax.experimental import pallas as pl
from jax.experimental.pallas import tpu as pltpu

_MIB = 1024 * 1024


# ----------------------------- parameter glue ------------------------------

def create_distance_matrix(kernel_size):
    center = kernel_size // 2
    coords = jnp.arange(kernel_size)
    y_grid, x_grid = jnp.meshgrid(coords, coords, indexing="ij")
    return jnp.abs(x_grid - center) + jnp.abs(y_grid - center)  # (K, K)


def calc_decay_matrix(w, u, kernel_size):
    """(C, K, K) float32 decay kernel, matching the PyTorch code (reference path)."""
    center = kernel_size // 2
    dist = create_distance_matrix(kernel_size).astype(jnp.float32)   # (K, K)
    decay = -dist[None, :, :] * w[:, None, None]                     # (C, K, K)
    decay = decay.at[:, center, center].add(u)
    return jnp.exp(decay)


# ------------------------------ Pallas kernel -------------------------------

def uwshift_kernel(x_ref, top_ref, bot_ref, wx_ref, wy_ref, cw_ref, out_ref,
                   yh_ref, *, K, pad, rows_per_chunk):
    # x_ref   : (1, tH, W, tC)   input tile (C on the 128-lane axis, W on sublanes)
    # top_ref : (1, pad, W, tC)  rows just above the tile (content unused at hi==0)
    # bot_ref : (1, pad, W, tC)  rows just below the tile (unused at hi==last)
    # wx_ref  : (K, tC)          horizontal taps  exp(-|dx-pad| * w_c)
    # wy_ref  : (K, tC)          vertical taps    exp(-|dy-pad| * w_c) * (1 - alpha_c)
    # cw_ref  : (1, tC)          fused center/residual weight alpha + (1-alpha)(exp(u)-1)
    # out_ref : (1, tH, W, tC)
    # yh_ref  : (1, tH + 2*pad, W, tC) f32 scratch: horizontally-convolved rows
    tH = x_ref.shape[1]
    W = x_ref.shape[2]
    tC = x_ref.shape[3]
    f32 = jnp.float32

    hi = pl.program_id(1)
    n_h = pl.num_programs(1)

    # Hoist per-tap weight broadcasts once (JAX does not CSE broadcast_in_dim).
    wxa = wx_ref[...].astype(f32)
    wya = wy_ref[...].astype(f32)
    wx = [wxa[k].reshape(1, 1, 1, tC) for k in range(K)]
    wy = [wya[k].reshape(1, 1, 1, tC) for k in range(K)]
    cw = cw_ref[...].astype(f32).reshape(1, 1, 1, tC)

    def hconv(v):
        """1-D conv along W with 'same' zero padding; dx shifts = XLU roll + mask."""
        R = v.shape[1]
        w_idx = lax.broadcasted_iota(jnp.int32, (1, R, W, tC), 2)
        acc = v * wx[pad]                                   # center tap, no shift
        for dx in range(K):
            if dx == pad:
                continue
            d = dx - pad                                    # window offset x[w + d]
            shifted = pltpu.roll(v, shift=(-d) % W, axis=2)
            valid = (w_idx < W - d) if d > 0 else (w_idx >= -d)
            acc = acc + jnp.where(valid, shifted, 0.0) * wx[dx]
        return acc

    # ---- pass 1: horizontal conv into the H-padded scratch -------------------
    # Halo rows above the tile ("same" zero padding at the image border).
    @pl.when(hi == 0)
    def _():
        yh_ref[:, 0:pad, :, :] = jnp.zeros((1, pad, W, tC), f32)

    @pl.when(hi > 0)
    def _():
        yh_ref[:, 0:pad, :, :] = hconv(top_ref[...].astype(f32))

    # Halo rows below the tile.
    @pl.when(hi == n_h - 1)
    def _():
        yh_ref[:, pad + tH:, :, :] = jnp.zeros((1, pad, W, tC), f32)

    @pl.when(hi < n_h - 1)
    def _():
        yh_ref[:, pad + tH:, :, :] = hconv(bot_ref[...].astype(f32))

    # Body rows, processed in row slabs so each slab stays in vregs across taps
    # and is stored to the scratch exactly once.
    h0 = 0
    while h0 < tH:
        r = min(rows_per_chunk, tH - h0)
        yh_ref[:, pad + h0:pad + h0 + r, :, :] = hconv(
            x_ref[:, h0:h0 + r, :, :].astype(f32))
        h0 += r

    # ---- pass 2: vertical conv + fused residual/center tap -------------------
    # dy slices of yh_ref are along dim 1 (not a vreg axis) -> pure address offsets.
    h0 = 0
    while h0 < tH:
        r = min(rows_per_chunk, tH - h0)
        acc = x_ref[:, h0:h0 + r, :, :].astype(f32) * cw
        for dy in range(K):
            acc = acc + yh_ref[:, h0 + dy:h0 + dy + r, :, :] * wy[dy]
        out_ref[:, h0:h0 + r, :, :] = acc.astype(out_ref.dtype)
        h0 += r


# --------------------------------- tiling -----------------------------------

def _vmem_budget_bytes():
    """(vmem_limit_bytes, per-step tile budget) derived from the chip's VMEM."""
    try:
        cap = int(pltpu.get_tpu_info().vmem_capacity_bytes)
    except Exception:
        cap = 64 * _MIB                      # conservative: v7x per-TensorCore VMEM
    limit = max(32 * _MIB, min(cap // 2, 64 * _MIB))   # 64 MiB on v5e/v6e, 32 on v7x
    return limit, (limit * 7) // 10


def _choose_blocks(H, W, C_pad, pad, itemsize, budget_bytes):
    """Jointly pick (block_h, block_c): largest tile whose footprint fits VMEM."""
    def footprint(bh, bc):
        tile = bh * W * bc * itemsize
        halo = pad * W * bc * itemsize
        scratch = (bh + 2 * pad) * W * bc * 4
        # 2x double-buffered in + out, 2 double-buffered halos, f32 scratch.
        return 4 * tile + 4 * halo + scratch

    bh_cands = [d for d in range(H, 0, -1)
                if H % d == 0 and (d == H or d % pad == 0)]
    bc_cands = [c for c in range(C_pad, 0, -128) if C_pad % c == 0] or [C_pad]

    best = None
    for bc in bc_cands:
        for bh in bh_cands:
            if footprint(bh, bc) <= budget_bytes:
                if best is None or bh * bc > best[0] * best[1]:
                    best = (bh, bc)
                break                       # descending: first fit is largest bh
    if best is None:
        best = (bh_cands[-1], bc_cands[-1])  # nothing fits: smallest legal tile
    return best


# --------------------------------- wrapper ----------------------------------

def uwshift_forward(x, patch_resolution, w, u, alpha, kernel_size,
                    *, block_h=None, block_c=None):
    """x: (B, T, C) with T = H*W. Returns (B, T, C). Matches UWShift.forward."""
    B, T, C = x.shape
    H, W = patch_resolution
    assert T == H * W
    K = kernel_size
    assert K % 2 == 1, "Kernel size must be odd."
    pad = K // 2

    if pad == 0:
        # 1x1 kernel degenerates to a per-channel scale; plain jnp.
        scale = jnp.exp(u)[None, None, :]
        a = alpha[None, None, :]
        return (x * a + (x * scale) * (1.0 - a)).astype(x.dtype)

    # ---- separable tap weights, alpha and (1-alpha) folded in ----
    f32 = jnp.float32
    dist = jnp.abs(jnp.arange(K) - pad).astype(f32)               # (K,)
    w32, u32, a32 = w.astype(f32), u.astype(f32), alpha.astype(f32)
    wx = jnp.exp(-dist[:, None] * w32[None, :])                   # (K, C)  horizontal
    wy = wx * (1.0 - a32)[None, :]                                # (K, C)  vertical*(1-a)
    cw = a32 + (1.0 - a32) * (jnp.exp(u32) - 1.0)                 # (C,)    center+residual

    # ---- lane-dense channel padding (C -> multiple of 128) ----
    C_pad = -(-C // 128) * 128
    x_nhwc = x.reshape(B, H, W, C)                                # C on the lane axis
    if C_pad != C:
        cpad = C_pad - C
        x_nhwc = jnp.pad(x_nhwc, ((0, 0), (0, 0), (0, 0), (0, cpad)))
        wx = jnp.pad(wx, ((0, 0), (0, cpad)))
        wy = jnp.pad(wy, ((0, 0), (0, cpad)))
        cw = jnp.pad(cw, ((0, cpad),))
    wx = wx.astype(f32)
    wy = wy.astype(f32)
    cw2 = cw.reshape(1, C_pad).astype(f32)

    # ---- tiling (generation-aware VMEM budget) ----
    vmem_limit, tile_budget = _vmem_budget_bytes()
    bh_auto, bc_auto = _choose_blocks(H, W, C_pad, pad, x.dtype.itemsize, tile_budget)
    if block_h is None:
        block_h = bh_auto
    if block_c is None:
        block_c = bc_auto
    assert C_pad % block_c == 0 and (block_c == C_pad or block_c % 128 == 0)
    assert H % block_h == 0 and (block_h == H or block_h % pad == 0)
    n_h = H // block_h
    n_c = C_pad // block_c

    # Row-slab size for the in-kernel chunk loops (slab + acc stay in vregs).
    rows = max(1, 16384 // max(1, W * block_c))
    rows = max(rows, -(-block_h // 32))          # cap unroll at ~32 slabs
    rows = min(rows, block_h)

    th_blocks = max(block_h // pad, 1)           # tile height in pad-row units
    last_pad_block = max(H // pad - 1, 0)        # last full pad-row block

    def x_map(b, hi, ci):
        return (b, hi, 0, ci)

    def top_map(b, hi, ci):                      # pad rows just above the tile
        return (b, jnp.maximum(hi * th_blocks - 1, 0), 0, ci)

    def bot_map(b, hi, ci):                      # pad rows just below the tile
        return (b, jnp.minimum((hi + 1) * th_blocks, last_pad_block), 0, ci)

    def w_map(b, hi, ci):
        return (0, ci)

    out_nhwc = pl.pallas_call(
        functools.partial(uwshift_kernel, K=K, pad=pad, rows_per_chunk=rows),
        out_shape=jax.ShapeDtypeStruct((B, H, W, C_pad), x.dtype),
        grid_spec=pltpu.PrefetchScalarGridSpec(
            num_scalar_prefetch=0,
            grid=(B, n_h, n_c),
            in_specs=[
                pl.BlockSpec((1, block_h, W, block_c), x_map),
                pl.BlockSpec((1, pad, W, block_c), top_map),
                pl.BlockSpec((1, pad, W, block_c), bot_map),
                pl.BlockSpec((K, block_c), w_map),
                pl.BlockSpec((K, block_c), w_map),
                pl.BlockSpec((1, block_c), w_map),
            ],
            out_specs=pl.BlockSpec((1, block_h, W, block_c), x_map),
            scratch_shapes=[
                pltpu.VMEM((1, block_h + 2 * pad, W, block_c), jnp.float32),
            ],
        ),
        compiler_params=pltpu.CompilerParams(
            dimension_semantics=("parallel", "parallel", "parallel"),
            vmem_limit_bytes=int(vmem_limit)),
    )(x_nhwc, x_nhwc, x_nhwc, wx, wy, cw2)

    if C_pad != C:
        out_nhwc = out_nhwc[:, :, :, :C]
    return out_nhwc.reshape(B, T, C)
    # TODO(synk): optional bf16 scratch/taps on v6e/v7x when x.dtype == bfloat16.


# ------------------------------- reference ----------------------------------

def uwshift_reference(x, patch_resolution, w, u, alpha, kernel_size):
    B, T, C = x.shape
    H, W = patch_resolution
    K = kernel_size
    pad = K // 2
    x_nhwc = x.reshape(B, H, W, C).astype(jnp.float32)
    x_pad = jnp.pad(x_nhwc, ((0, 0), (pad, pad), (pad, pad), (0, 0)))
    decay = calc_decay_matrix(w, u, K)  # (C, K, K)
    acc = jnp.zeros_like(x_nhwc)
    for dy in range(K):
        for dx in range(K):
            acc = acc + (x_pad[:, dy:dy + H, dx:dx + W, :]
                         * decay[:, dy, dx][None, None, None, :])
    out = (x_nhwc * alpha[None, None, None, :]
           + acc * (1.0 - alpha[None, None, None, :]))
    return out.reshape(B, T, C).astype(x.dtype)


# ---------------------------------- main -------------------------------------

if __name__ == "__main__":
    master_key = jax.random.PRNGKey(0)

    def make_case(case_key, B, H, W, C):
        kx, kw, ku, ka = jax.random.split(case_key, 4)
        x = jax.random.normal(kx, (B, H * W, C), dtype=jnp.float32)
        w_p = jnp.ones((C,), jnp.float32) / 2 + 0.05 * jax.random.normal(kw, (C,))
        u_p = jnp.ones((C,), jnp.float32) / 2 + 0.05 * jax.random.normal(ku, (C,))
        a_p = jnp.ones((C,), jnp.float32) / 2 + 0.05 * jax.random.normal(ka, (C,))
        return x, w_p, u_p, a_p

    cases = [
        # (B,  H,  W,   C,  K, block_h, block_c)
        (2, 16, 16,   8, 3, None, None),   # C padded 8->128, auto tile (single H tile)
        (2, 16, 16,   8, 3, 8,    None),   # H tiled: exercises the halo path
        (2,  8,  8, 256, 3, 4,    128),    # C tiled into 128-lane slabs + halos
        (1, 16, 16,   8, 5, 8,    None),   # 5x5 kernel: pad = 2 halo rows
        (2, 16, 16, 128, 3, None, None),   # lane-exact C, fully automatic tiling
    ]
    keys = jax.random.split(master_key, len(cases))
    for case_key, (B, H, W, C, K, bh, bc) in zip(keys, cases):
        x, w_p, u_p, a_p = make_case(case_key, B, H, W, C)
        out = uwshift_forward(x, (H, W), w_p, u_p, a_p, K, block_h=bh, block_c=bc)
        out = jax.block_until_ready(out)
        ref = uwshift_reference(x, (H, W), w_p, u_p, a_p, K)
        assert out.shape == (B, H * W, C)
        assert jnp.allclose(out, ref, atol=2e-4, rtol=2e-4), (B, H, W, C, K, bh, bc)

    print("KERNEL_OK")
</pallas_src>

<mosaic_0001>
module attributes {stable_mosaic.version = 11 : i64} {
  func.func @uwshift_kernel(%arg0: i32, %arg1: i32, %arg2: i32, %arg3: memref<1x16x16x128xf32, #tpu.memory_space<vmem>>, %arg4: memref<1x1x16x128xf32, #tpu.memory_space<vmem>>, %arg5: memref<1x1x16x128xf32, #tpu.memory_space<vmem>>, %arg6: memref<3x128xf32, #tpu.memory_space<vmem>>, %arg7: memref<3x128xf32, #tpu.memory_space<vmem>>, %arg8: memref<1x128xf32, #tpu.memory_space<vmem>>, %arg9: memref<1x16x16x128xf32, #tpu.memory_space<vmem>>, %arg10: memref<1x18x16x128xf32, #tpu.memory_space<vmem>>) attributes {dimension_semantics = [#tpu.dimension_semantics<parallel>, #tpu.dimension_semantics<parallel>, #tpu.dimension_semantics<parallel>], iteration_bounds = array<i64: 2, 1, 1>, scalar_prefetch = 0 : i64, scratch_operands = 1 : i64, tpu.core_type = #tpu.core_type<tc>, window_params = [{transform_indices = @transform_0, window_bounds = array<i64: 1, 16, 16, 128>}, {transform_indices = @transform_1, window_bounds = array<i64: 1, 1, 16, 128>}, {transform_indices = @transform_2, window_bounds = array<i64: 1, 1, 16, 128>}, {transform_indices = @transform_3, window_bounds = array<i64: 3, 128>}, {transform_indices = @transform_4, window_bounds = array<i64: 3, 128>}, {transform_indices = @transform_5, window_bounds = array<i64: 1, 128>}, {transform_indices = @transform_6, window_bounds = array<i64: 1, 16, 16, 128>}]} {
    %c0 = arith.constant 0 : index
    %c0_0 = arith.constant 0 : index
    %0 = vector.load %arg6[%c0, %c0_0] : memref<3x128xf32, #tpu.memory_space<vmem>>, vector<3x128xf32>
    %c0_1 = arith.constant 0 : index
    %c0_2 = arith.constant 0 : index
    %1 = vector.load %arg7[%c0_1, %c0_2] : memref<3x128xf32, #tpu.memory_space<vmem>>, vector<3x128xf32>
    %2 = vector.extract_strided_slice %0 {offsets = [0, 0], sizes = [1, 128], strides = [1, 1]} : vector<3x128xf32> to vector<1x128xf32>
    %3 = vector.shape_cast %2 : vector<1x128xf32> to vector<128xf32>
    %4 = vector.shape_cast %3 : vector<128xf32> to vector<1x1x1x128xf32>
    %5 = vector.extract_strided_slice %0 {offsets = [1, 0], sizes = [1, 128], strides = [1, 1]} : vector<3x128xf32> to vector<1x128xf32>
    %6 = vector.shape_cast %5 : vector<1x128xf32> to vector<128xf32>
    %7 = vector.shape_cast %6 : vector<128xf32> to vector<1x1x1x128xf32>
    %8 = vector.extract_strided_slice %0 {offsets = [2, 0], sizes = [1, 128], strides = [1, 1]} : vector<3x128xf32> to vector<1x128xf32>
    %9 = vector.shape_cast %8 : vector<1x128xf32> to vector<128xf32>
    %10 = vector.shape_cast %9 : vector<128xf32> to vector<1x1x1x128xf32>
    %11 = vector.extract_strided_slice %1 {offsets = [0, 0], sizes = [1, 128], strides = [1, 1]} : vector<3x128xf32> to vector<1x128xf32>
    %12 = vector.shape_cast %11 : vector<1x128xf32> to vector<128xf32>
    %13 = vector.shape_cast %12 : vector<128xf32> to vector<1x1x1x128xf32>
    %14 = vector.extract_strided_slice %1 {offsets = [1, 0], sizes = [1, 128], strides = [1, 1]} : vector<3x128xf32> to vector<1x128xf32>
    %15 = vector.shape_cast %14 : vector<1x128xf32> to vector<128xf32>
    %16 = vector.shape_cast %15 : vector<128xf32> to vector<1x1x1x128xf32>
    %17 = vector.extract_strided_slice %1 {offsets = [2, 0], sizes = [1, 128], strides = [1, 1]} : vector<3x128xf32> to vector<1x128xf32>
    %18 = vector.shape_cast %17 : vector<1x128xf32> to vector<128xf32>
    %19 = vector.shape_cast %18 : vector<128xf32> to vector<1x1x1x128xf32>
    %c0_3 = arith.constant 0 : index
    %c0_4 = arith.constant 0 : index
    %20 = vector.load %arg8[%c0_3, %c0_4] : memref<1x128xf32, #tpu.memory_space<vmem>>, vector<1x128xf32>
    %21 = vector.shape_cast %20 : vector<1x128xf32> to vector<1x1x1x128xf32>
    %c0_i32 = arith.constant 0 : i32
    %22 = arith.cmpi eq, %arg1, %c0_i32 : i32
    %23 = arith.extui %22 : i1 to i32
    %c0_i32_5 = arith.constant 0 : i32
    %24 = arith.cmpi ne, %23, %c0_i32_5 : i32
    scf.if %24 {
      %cst_72 = arith.constant 0.000000e+00 : f32
      %108 = vector.broadcast %cst_72 : f32 to vector<1x1x16x128xf32>
      %c0_73 = arith.constant 0 : index
      %c0_74 = arith.constant 0 : index
      %c0_75 = arith.constant 0 : index
      %c0_76 = arith.constant 0 : index
      %109 = vector.load %arg10[%c0_73, %c0_74, %c0_75, %c0_76] : memref<1x18x16x128xf32, #tpu.memory_space<vmem>>, vector<1x1x16x128xf32>
      tpu.vector_store %arg10[%c0_73, %c0_74, %c0_75, %c0_76], %108 {strides = array<i32>} : memref<1x18x16x128xf32, #tpu.memory_space<vmem>>, vector<1x1x16x128xf32>,
    } else {
    }
    %c0_i32_6 = arith.constant 0 : i32
    %25 = arith.cmpi sgt, %arg1, %c0_i32_6 : i32
    %26 = arith.extui %25 : i1 to i32
    %c0_i32_7 = arith.constant 0 : i32
    %27 = arith.cmpi ne, %26, %c0_i32_7 : i32
    scf.if %27 {
      %c0_72 = arith.constant 0 : index
      %c0_73 = arith.constant 0 : index
      %c0_74 = arith.constant 0 : index
      %c0_75 = arith.constant 0 : index
      %108 = vector.load %arg4[%c0_72, %c0_73, %c0_74, %c0_75] : memref<1x1x16x128xf32, #tpu.memory_space<vmem>>, vector<1x1x16x128xf32>
      %109 = tpu.iota {dimensions = array<i32: 2>} : vector<1x1x16x128xi32>
      %110 = vector.broadcast %7 : vector<1x1x1x128xf32> to vector<1x1x16x128xf32>
      %111 = arith.mulf %108, %110 : vector<1x1x16x128xf32>
      %c1_i32_76 = arith.constant 1 : i32
      %112 = tpu.dynamic_rotate %108 by %c1_i32_76 dim 2 : vector<1x1x16x128xf32>, i32 -> vector<1x1x16x128xf32>
      %c1_i32_77 = arith.constant 1 : i32
      %113 = vector.broadcast %c1_i32_77 : i32 to vector<1x1x16x128xi32>
      %114 = arith.cmpi sge, %109, %113 : vector<1x1x16x128xi32>
      %cst_78 = arith.constant 0.000000e+00 : f32
      %115 = vector.broadcast %cst_78 : f32 to vector<1x1x16x128xf32>
      %116 = arith.select %114, %112, %115 : vector<1x1x16x128xi1>, vector<1x1x16x128xf32>
      %117 = vector.broadcast %4 : vector<1x1x1x128xf32> to vector<1x1x16x128xf32>
      %118 = arith.mulf %116, %117 : vector<1x1x16x128xf32>
      %119 = arith.addf %111, %118 : vector<1x1x16x128xf32>
      %c15_i32_79 = arith.constant 15 : i32
      %120 = tpu.dynamic_rotate %108 by %c15_i32_79 dim 2 : vector<1x1x16x128xf32>, i32 -> vector<1x1x16x128xf32>
      %c15_i32_80 = arith.constant 15 : i32
      %121 = vector.broadcast %c15_i32_80 : i32 to vector<1x1x16x128xi32>
      %122 = arith.cmpi slt, %109, %121 : vector<1x1x16x128xi32>
      %cst_81 = arith.constant 0.000000e+00 : f32
      %123 = vector.broadcast %cst_81 : f32 to vector<1x1x16x128xf32>
      %124 = arith.select %122, %120, %123 : vector<1x1x16x128xi1>, vector<1x1x16x128xf32>
      %125 = vector.broadcast %10 : vector<1x1x1x128xf32> to vector<1x1x16x128xf32>
      %126 = arith.mulf %124, %125 : vector<1x1x16x128xf32>
      %127 = arith.addf %119, %126 : vector<1x1x16x128xf32>
      %c0_82 = arith.constant 0 : index
      %c0_83 = arith.constant 0 : index
      %c0_84 = arith.constant 0 : index
      %c0_85 = arith.constant 0 : index
      %128 = vector.load %arg10[%c0_82, %c0_83, %c0_84, %c0_85] : memref<1x18x16x128xf32, #tpu.memory_space<vmem>>, vector<1x1x16x128xf32>
      tpu.vector_store %arg10[%c0_82, %c0_83, %c0_84, %c0_85], %127 {strides = array<i32>} : memref<1x18x16x128xf32, #tpu.memory_space<vmem>>, vector<1x1x16x128xf32>,
    } else {
    }
    %c0_i32_8 = arith.constant 0 : i32
    %28 = arith.cmpi eq, %arg1, %c0_i32_8 : i32
    %29 = arith.extui %28 : i1 to i32
    %c0_i32_9 = arith.constant 0 : i32
    %30 = arith.cmpi ne, %29, %c0_i32_9 : i32
    scf.if %30 {
      %cst_72 = arith.constant 0.000000e+00 : f32
      %108 = vector.broadcast %cst_72 : f32 to vector<1x1x16x128xf32>
      %c0_73 = arith.constant 0 : index
      %c17 = arith.constant 17 : index
      %c0_74 = arith.constant 0 : index
      %c0_75 = arith.constant 0 : index
      %109 = vector.load %arg10[%c0_73, %c17, %c0_74, %c0_75] : memref<1x18x16x128xf32, #tpu.memory_space<vmem>>, vector<1x1x16x128xf32>
      tpu.vector_store %arg10[%c0_73, %c17, %c0_74, %c0_75], %108 {strides = array<i32>} : memref<1x18x16x128xf32, #tpu.memory_space<vmem>>, vector<1x1x16x128xf32>,
    } else {
    }
    %c0_i32_10 = arith.constant 0 : i32
    %31 = arith.cmpi slt, %arg1, %c0_i32_10 : i32
    %32 = arith.extui %31 : i1 to i32
    %c0_i32_11 = arith.constant 0 : i32
    %33 = arith.cmpi ne, %32, %c0_i32_11 : i32
    scf.if %33 {
      %c0_72 = arith.constant 0 : index
      %c0_73 = arith.constant 0 : index
      %c0_74 = arith.constant 0 : index
      %c0_75 = arith.constant 0 : index
      %108 = vector.load %arg5[%c0_72, %c0_73, %c0_74, %c0_75] : memref<1x1x16x128xf32, #tpu.memory_space<vmem>>, vector<1x1x16x128xf32>
      %109 = tpu.iota {dimensions = array<i32: 2>} : vector<1x1x16x128xi32>
      %110 = vector.broadcast %7 : vector<1x1x1x128xf32> to vector<1x1x16x128xf32>
      %111 = arith.mulf %108, %110 : vector<1x1x16x128xf32>
      %c1_i32_76 = arith.constant 1 : i32
      %112 = tpu.dynamic_rotate %108 by %c1_i32_76 dim 2 : vector<1x1x16x128xf32>, i32 -> vector<1x1x16x128xf32>
      %c1_i32_77 = arith.constant 1 : i32
      %113 = vector.broadcast %c1_i32_77 : i32 to vector<1x1x16x128xi32>
      %114 = arith.cmpi sge, %109, %113 : vector<1x1x16x128xi32>
      %cst_78 = arith.constant 0.000000e+00 : f32
      %115 = vector.broadcast %cst_78 : f32 to vector<1x1x16x128xf32>
      %116 = arith.select %114, %112, %115 : vector<1x1x16x128xi1>, vector<1x1x16x128xf32>
      %117 = vector.broadcast %4 : vector<1x1x1x128xf32> to vector<1x1x16x128xf32>
      %118 = arith.mulf %116, %117 : vector<1x1x16x128xf32>
      %119 = arith.addf %111, %118 : vector<1x1x16x128xf32>
      %c15_i32_79 = arith.constant 15 : i32
      %120 = tpu.dynamic_rotate %108 by %c15_i32_79 dim 2 : vector<1x1x16x128xf32>, i32 -> vector<1x1x16x128xf32>
      %c15_i32_80 = arith.constant 15 : i32
      %121 = vector.broadcast %c15_i32_80 : i32 to vector<1x1x16x128xi32>
      %122 = arith.cmpi slt, %109, %121 : vector<1x1x16x128xi32>
      %cst_81 = arith.constant 0.000000e+00 : f32
      %123 = vector.broadcast %cst_81 : f32 to vector<1x1x16x128xf32>
      %124 = arith.select %122, %120, %123 : vector<1x1x16x128xi1>, vector<1x1x16x128xf32>
      %125 = vector.broadcast %10 : vector<1x1x1x128xf32> to vector<1x1x16x128xf32>
      %126 = arith.mulf %124, %125 : vector<1x1x16x128xf32>
      %127 = arith.addf %119, %126 : vector<1x1x16x128xf32>
      %c0_82 = arith.constant 0 : index
      %c17 = arith.constant 17 : index
      %c0_83 = arith.constant 0 : index
      %c0_84 = arith.constant 0 : index
      %128 = vector.load %arg10[%c0_82, %c17, %c0_83, %c0_84] : memref<1x18x16x128xf32, #tpu.memory_space<vmem>>, vector<1x1x16x128xf32>
      tpu.vector_store %arg10[%c0_82, %c17, %c0_83, %c0_84], %127 {strides = array<i32>} : memref<1x18x16x128xf32, #tpu.memory_space<vmem>>, vector<1x1x16x128xf32>,
    } else {
    }
    %c0_12 = arith.constant 0 : index
    %c0_13 = arith.constant 0 : index
    %c0_14 = arith.constant 0 : index
    %c0_15 = arith.constant 0 : index
    %34 = vector.load %arg3[%c0_12, %c0_13, %c0_14, %c0_15] : memref<1x16x16x128xf32, #tpu.memory_space<vmem>>, vector<1x8x16x128xf32>
    %35 = tpu.iota {dimensions = array<i32: 2>} : vector<1x8x16x128xi32>
    %36 = vector.broadcast %7 : vector<1x1x1x128xf32> to vector<1x8x16x128xf32>
    %37 = arith.mulf %34, %36 : vector<1x8x16x128xf32>
    %c1_i32 = arith.constant 1 : i32
    %38 = tpu.dynamic_rotate %34 by %c1_i32 dim 2 : vector<1x8x16x128xf32>, i32 -> vector<1x8x16x128xf32>
    %c1_i32_16 = arith.constant 1 : i32
    %39 = vector.broadcast %c1_i32_16 : i32 to vector<1x8x16x128xi32>
    %40 = arith.cmpi sge, %35, %39 : vector<1x8x16x128xi32>
    %cst = arith.constant 0.000000e+00 : f32
    %41 = vector.broadcast %cst : f32 to vector<1x8x16x128xf32>
    %42 = arith.select %40, %38, %41 : vector<1x8x16x128xi1>, vector<1x8x16x128xf32>
    %43 = vector.broadcast %4 : vector<1x1x1x128xf32> to vector<1x8x16x128xf32>
    %44 = arith.mulf %42, %43 : vector<1x8x16x128xf32>
    %45 = arith.addf %37, %44 : vector<1x8x16x128xf32>
    %c15_i32 = arith.constant 15 : i32
    %46 = tpu.dynamic_rotate %34 by %c15_i32 dim 2 : vector<1x8x16x128xf32>, i32 -> vector<1x8x16x128xf32>
    %c15_i32_17 = arith.constant 15 : i32
    %47 = vector.broadcast %c15_i32_17 : i32 to vector<1x8x16x128xi32>
    %48 = arith.cmpi slt, %35, %47 : vector<1x8x16x128xi32>
    %cst_18 = arith.constant 0.000000e+00 : f32
    %49 = vector.broadcast %cst_18 : f32 to vector<1x8x16x128xf32>
    %50 = arith.select %48, %46, %49 : vector<1x8x16x128xi1>, vector<1x8x16x128xf32>
    %51 = vector.broadcast %10 : vector<1x1x1x128xf32> to vector<1x8x16x128xf32>
    %52 = arith.mulf %50, %51 : vector<1x8x16x128xf32>
    %53 = arith.addf %45, %52 : vector<1x8x16x128xf32>
    %c0_19 = arith.constant 0 : index
    %c1 = arith.constant 1 : index
    %c0_20 = arith.constant 0 : index
    %c0_21 = arith.constant 0 : index
    %54 = vector.load %arg10[%c0_19, %c1, %c0_20, %c0_21] : memref<1x18x16x128xf32, #tpu.memory_space<vmem>>, vector<1x8x16x128xf32>
    tpu.vector_store %arg10[%c0_19, %c1, %c0_20, %c0_21], %53 {strides = array<i32>} : memref<1x18x16x128xf32, #tpu.memory_space<vmem>>, vector<1x8x16x128xf32>,
    %c0_22 = arith.constant 0 : index
    %c8 = arith.constant 8 : index
    %c0_23 = arith.constant 0 : index
    %c0_24 = arith.constant 0 : index
    %55 = vector.load %arg3[%c0_22, %c8, %c0_23, %c0_24] : memref<1x16x16x128xf32, #tpu.memory_space<vmem>>, vector<1x8x16x128xf32>
    %56 = tpu.iota {dimensions = array<i32: 2>} : vector<1x8x16x128xi32>
    %57 = vector.broadcast %7 : vector<1x1x1x128xf32> to vector<1x8x16x128xf32>
    %58 = arith.mulf %55, %57 : vector<1x8x16x128xf32>
    %c1_i32_25 = arith.constant 1 : i32
    %59 = tpu.dynamic_rotate %55 by %c1_i32_25 dim 2 : vector<1x8x16x128xf32>, i32 -> vector<1x8x16x128xf32>
    %c1_i32_26 = arith.constant 1 : i32
    %60 = vector.broadcast %c1_i32_26 : i32 to vector<1x8x16x128xi32>
    %61 = arith.cmpi sge, %56, %60 : vector<1x8x16x128xi32>
    %cst_27 = arith.constant 0.000000e+00 : f32
    %62 = vector.broadcast %cst_27 : f32 to vector<1x8x16x128xf32>
    %63 = arith.select %61, %59, %62 : vector<1x8x16x128xi1>, vector<1x8x16x128xf32>
    %64 = vector.broadcast %4 : vector<1x1x1x128xf32> to vector<1x8x16x128xf32>
    %65 = arith.mulf %63, %64 : vector<1x8x16x128xf32>
    %66 = arith.addf %58, %65 : vector<1x8x16x128xf32>
    %c15_i32_28 = arith.constant 15 : i32
    %67 = tpu.dynamic_rotate %55 by %c15_i32_28 dim 2 : vector<1x8x16x128xf32>, i32 -> vector<1x8x16x128xf32>
    %c15_i32_29 = arith.constant 15 : i32
    %68 = vector.broadcast %c15_i32_29 : i32 to vector<1x8x16x128xi32>
    %69 = arith.cmpi slt, %56, %68 : vector<1x8x16x128xi32>
    %cst_30 = arith.constant 0.000000e+00 : f32
    %70 = vector.broadcast %cst_30 : f32 to vector<1x8x16x128xf32>
    %71 = arith.select %69, %67, %70 : vector<1x8x16x128xi1>, vector<1x8x16x128xf32>
    %72 = vector.broadcast %10 : vector<1x1x1x128xf32> to vector<1x8x16x128xf32>
    %73 = arith.mulf %71, %72 : vector<1x8x16x128xf32>
    %74 = arith.addf %66, %73 : vector<1x8x16x128xf32>
    %c0_31 = arith.constant 0 : index
    %c9 = arith.constant 9 : index
    %c0_32 = arith.constant 0 : index
    %c0_33 = arith.constant 0 : index
    %75 = vector.load %arg10[%c0_31, %c9, %c0_32, %c0_33] : memref<1x18x16x128xf32, #tpu.memory_space<vmem>>, vector<1x8x16x128xf32>
    tpu.vector_store %arg10[%c0_31, %c9, %c0_32, %c0_33], %74 {strides = array<i32>} : memref<1x18x16x128xf32, #tpu.memory_space<vmem>>, vector<1x8x16x128xf32>,
    %c0_34 = arith.constant 0 : index
    %c0_35 = arith.constant 0 : index
    %c0_36 = arith.constant 0 : index
    %c0_37 = arith.constant 0 : index
    %76 = vector.load %arg3[%c0_34, %c0_35, %c0_36, %c0_37] : memref<1x16x16x128xf32, #tpu.memory_space<vmem>>, vector<1x8x16x128xf32>
    %77 = vector.broadcast %21 : vector<1x1x1x128xf32> to vector<1x8x16x128xf32>
    %78 = arith.mulf %76, %77 : vector<1x8x16x128xf32>
    %c0_38 = arith.constant 0 : index
    %c0_39 = arith.constant 0 : index
    %c0_40 = arith.constant 0 : index
    %c0_41 = arith.constant 0 : index
    %79 = vector.load %arg10[%c0_38, %c0_39, %c0_40, %c0_41] : memref<1x18x16x128xf32, #tpu.memory_space<vmem>>, vector<1x8x16x128xf32>
    %80 = vector.broadcast %13 : vector<1x1x1x128xf32> to vector<1x8x16x128xf32>
    %81 = arith.mulf %79, %80 : vector<1x8x16x128xf32>
    %82 = arith.addf %78, %81 : vector<1x8x16x128xf32>
    %c0_42 = arith.constant 0 : index
    %c1_43 = arith.constant 1 : index
    %c0_44 = arith.constant 0 : index
    %c0_45 = arith.constant 0 : index
    %83 = vector.load %arg10[%c0_42, %c1_43, %c0_44, %c0_45] : memref<1x18x16x128xf32, #tpu.memory_space<vmem>>, vector<1x8x16x128xf32>
    %84 = vector.broadcast %16 : vector<1x1x1x128xf32> to vector<1x8x16x128xf32>
    %85 = arith.mulf %83, %84 : vector<1x8x16x128xf32>
    %86 = arith.addf %82, %85 : vector<1x8x16x128xf32>
    %c0_46 = arith.constant 0 : index
    %c2 = arith.constant 2 : index
    %c0_47 = arith.constant 0 : index
    %c0_48 = arith.constant 0 : index
    %87 = vector.load %arg10[%c0_46, %c2, %c0_47, %c0_48] : memref<1x18x16x128xf32, #tpu.memory_space<vmem>>, vector<1x8x16x128xf32>
    %88 = vector.broadcast %19 : vector<1x1x1x128xf32> to vector<1x8x16x128xf32>
    %89 = arith.mulf %87, %88 : vector<1x8x16x128xf32>
    %90 = arith.addf %86, %89 : vector<1x8x16x128xf32>
    %c0_49 = arith.constant 0 : index
    %c0_50 = arith.constant 0 : index
    %c0_51 = arith.constant 0 : index
    %c0_52 = arith.constant 0 : index
    %91 = vector.load %arg9[%c0_49, %c0_50, %c0_51, %c0_52] : memref<1x16x16x128xf32, #tpu.memory_space<vmem>>, vector<1x8x16x128xf32>
    tpu.vector_store %arg9[%c0_49, %c0_50, %c0_51, %c0_52], %90 {strides = array<i32>} : memref<1x16x16x128xf32, #tpu.memory_space<vmem>>, vector<1x8x16x128xf32>,
    %c0_53 = arith.constant 0 : index
    %c8_54 = arith.constant 8 : index
    %c0_55 = arith.constant 0 : index
    %c0_56 = arith.constant 0 : index
    %92 = vector.load %arg3[%c0_53, %c8_54, %c0_55, %c0_56] : memref<1x16x16x128xf32, #tpu.memory_space<vmem>>, vector<1x8x16x128xf32>
    %93 = vector.broadcast %21 : vector<1x1x1x128xf32> to vector<1x8x16x128xf32>
    %94 = arith.mulf %92, %93 : vector<1x8x16x128xf32>
    %c0_57 = arith.constant 0 : index
    %c8_58 = arith.constant 8 : index
    %c0_59 = arith.constant 0 : index
    %c0_60 = arith.constant 0 : index
    %95 = vector.load %arg10[%c0_57, %c8_58, %c0_59, %c0_60] : memref<1x18x16x128xf32, #tpu.memory_space<vmem>>, vector<1x8x16x128xf32>
    %96 = vector.broadcast %13 : vector<1x1x1x128xf32> to vector<1x8x16x128xf32>
    %97 = arith.mulf %95, %96 : vector<1x8x16x128xf32>
    %98 = arith.addf %94, %97 : vector<1x8x16x128xf32>
    %c0_61 = arith.constant 0 : index
    %c9_62 = arith.constant 9 : index
    %c0_63 = arith.constant 0 : index
    %c0_64 = arith.constant 0 : index
    %99 = vector.load %arg10[%c0_61, %c9_62, %c0_63, %c0_64] : memref<1x18x16x128xf32, #tpu.memory_space<vmem>>, vector<1x8x16x128xf32>
    %100 = vector.broadcast %16 : vector<1x1x1x128xf32> to vector<1x8x16x128xf32>
    %101 = arith.mulf %99, %100 : vector<1x8x16x128xf32>
    %102 = arith.addf %98, %101 : vector<1x8x16x128xf32>
    %c0_65 = arith.constant 0 : index
    %c10 = arith.constant 10 : index
    %c0_66 = arith.constant 0 : index
    %c0_67 = arith.constant 0 : index
    %103 = vector.load %arg10[%c0_65, %c10, %c0_66, %c0_67] : memref<1x18x16x128xf32, #tpu.memory_space<vmem>>, vector<1x8x16x128xf32>
    %104 = vector.broadcast %19 : vector<1x1x1x128xf32> to vector<1x8x16x128xf32>
    %105 = arith.mulf %103, %104 : vector<1x8x16x128xf32>
    %106 = arith.addf %102, %105 : vector<1x8x16x128xf32>
    %c0_68 = arith.constant 0 : index
    %c8_69 = arith.constant 8 : index
    %c0_70 = arith.constant 0 : index
    %c0_71 = arith.constant 0 : index
    %107 = vector.load %arg9[%c0_68, %c8_69, %c0_70, %c0_71] : memref<1x16x16x128xf32, #tpu.memory_space<vmem>>, vector<1x8x16x128xf32>
    tpu.vector_store %arg9[%c0_68, %c8_69, %c0_70, %c0_71], %106 {strides = array<i32>} : memref<1x16x16x128xf32, #tpu.memory_space<vmem>>, vector<1x8x16x128xf32>,
    return
  }
  func.func @transform_0(%arg0: i32, %arg1: i32, %arg2: i32) -> (i32, i32, i32, i32) {
    %c0_i32 = arith.constant 0 : i32
    %c0_i32_0 = arith.constant 0 : i32
    return %arg0, %arg1, %c0_i32, %arg2 : i32, i32, i32, i32
  }
  func.func @transform_1(%arg0: i32, %arg1: i32, %arg2: i32) -> (i32, i32, i32, i32) {
    %c16_i32 = arith.constant 16 : i32
    %0 = arith.muli %arg1, %c16_i32 : i32
    %c1_i32 = arith.constant 1 : i32
    %1 = arith.subi %0, %c1_i32 : i32
    %c0_i32 = arith.constant 0 : i32
    %2 = arith.maxsi %1, %c0_i32 : i32
    %c0_i32_0 = arith.constant 0 : i32
    %c0_i32_1 = arith.constant 0 : i32
    return %arg0, %2, %c0_i32_0, %arg2 : i32, i32, i32, i32
  }
  func.func @transform_2(%arg0: i32, %arg1: i32, %arg2: i32) -> (i32, i32, i32, i32) {
    %c1_i32 = arith.constant 1 : i32
    %0 = arith.addi %arg1, %c1_i32 : i32
    %c16_i32 = arith.constant 16 : i32
    %1 = arith.muli %0, %c16_i32 : i32
    %c15_i32 = arith.constant 15 : i32
    %2 = arith.minsi %1, %c15_i32 : i32
    %c0_i32 = arith.constant 0 : i32
    %c0_i32_0 = arith.constant 0 : i32
    return %arg0, %2, %c0_i32, %arg2 : i32, i32, i32, i32
  }
  func.func @transform_3(%arg0: i32, %arg1: i32, %arg2: i32) -> (i32, i32) {
    %c0_i32 = arith.constant 0 : i32
    %c0_i32_0 = arith.constant 0 : i32
    return %c0_i32, %arg2 : i32, i32
  }
  func.func @transform_4(%arg0: i32, %arg1: i32, %arg2: i32) -> (i32, i32) {
    %c0_i32 = arith.constant 0 : i32
    %c0_i32_0 = arith.constant 0 : i32
    return %c0_i32, %arg2 : i32, i32
  }
  func.func @transform_5(%arg0: i32, %arg1: i32, %arg2: i32) -> (i32, i32) {
    %c0_i32 = arith.constant 0 : i32
    %c0_i32_0 = arith.constant 0 : i32
    return %c0_i32, %arg2 : i32, i32
  }
  func.func @transform_6(%arg0: i32, %arg1: i32, %arg2: i32) -> (i32, i32, i32, i32) {
    %c0_i32 = arith.constant 0 : i32
    %c0_i32_0 = arith.constant 0 : i32
    return %arg0, %arg1, %c0_i32, %arg2 : i32, i32, i32, i32
  }
}

</mosaic_0001>

<bundles_post_ra>
// kernel: tpu_custom_call.1
= control target key start
LH: loop header
LB: loop body
LE: loop exit
PB: predicated region body
PF: predicated region fallthrough
CT: control target
= control target key end

     0   :  { %s2939_s0 = inlined_call_operand.hbm [shape: f32[2,16,16,128], index: 0, kind: input, shape index: {}]   ;;  %s2940_s1 = inlined_call_operand.hbm [shape: f32[2,16,16,128], index: 1, kind: input, shape index: {}]   ;;  %s2941_s2 = inlined_call_operand.hbm [shape: f32[2,16,16,128], index: 2, kind: input, shape index: {}]   ;;  %s2942_s3 = inlined_call_operand.hbm [shape: f32[3,128], index: 3, kind: input, shape index: {}]   ;;  %s2943_s4 = inlined_call_operand.hbm [shape: f32[3,128], index: 4, kind: input, shape index: {}]   ;;  %s2944_s5 = inlined_call_operand.vmem [shape: f32[1,128], index: 5, kind: input, shape index: {}]   ;;  %s2945_s6 = inlined_call_operand.hbm [shape: f32[2,16,16,128], index: 6, kind: output, shape index: {}]  }
   0x1   :  { %2955 = sst [smem:[#allocation25_spill]] %s2940_s1 }
   0x2   :  { %2956 = sst [smem:[#allocation26_spill]] %s2942_s3 }
   0x3   :  { %2957 = sst [smem:[#allocation27_spill]] %s2943_s4 }
   0x4   :  { %11 = vsyncpa [#allocation4], 0 }
   0x5   :  { %13 = vsyncpa [#allocation4 + $0x1], 0 }
   0x6   :  { %14 = vsyncpa [#allocation7], 0 }
   0x7   :  { %16 = vsyncpa [#allocation7 + $0x1], 0 }
   0x8   :  { %17 = vsyncpa [#allocation10], 0 }
   0x9   :  { %18 = vsyncpa [#allocation5], 0 }
   0xa   :  { %20 = vsyncpa [#allocation5 + $0x1], 0  ;;  %s2076_s21 = smov 0   ;;  %s2078_s22 = smov 0  }
   0xb   :  { %s2080_s23 = smov 0   ;;  %s2082_s24 = smov 0  }
   0xc   :  { %s2084_s25 = smov 0   ;;  %s2086_s26 = smov 0  }
   0xd LB: > { %2958 = sst [smem:[#allocation17_spill]] %s2013_s21  ;;  %s2107_s27 = sadd.s32 4294967295, %s2033_s26   ;;  %s2033_s26 = sphi %s2086_s26, %s26_s26   ;;  %s2029_s25 = sphi %s2084_s25, %s2983_s25   ;;  %s2025_s24 = sphi %s2082_s24, %s2982_s24   ;;  %s2021_s23 = sphi %s2080_s23, %s2981_s23   ;;  %s2017_s22 = sphi %s2078_s22, %s2985_s22   ;;  %s2013_s21 = sphi %s2076_s21, %s2984_s21  }
   0xe   : > { %2959 = sst [smem:[#allocation18_spill]] %s2021_s23  ;;  %s1613_s28 = sadd.s32 4294967294, %s2033_s26  }
   0xf   : > { %2960 = sst [smem:[#allocation19_spill]] %s2029_s25  ;;  %s56_s29 = sadd.s32 1, %s2021_s23 }
  0x10   : > { %2961 = sst [smem:[#allocation20_spill]] %s2033_s26  ;;  %p63_p0 = scmp.ne.s32.totalorder %s2021_s23, %s2017_s22 }
  0x11   : > { %p64_p1 = scmp.eq.s32.totalorder %s2033_s26, 0  ;;  %p69_p2 = scmp.ne.s32.totalorder %s2017_s22, %s2013_s21 }
  0x12   : > { %p70_p3 = scmp.eq.s32.totalorder %s2107_s27, 0  ;;  %p251_p4 = scmp.eq.s32.totalorder %s2107_s27, 1 }
  0x13   : > { %p2118_p5 = por %p64_p1, %p63_p0  ;;  %p257_p6 = scmp.eq.s32.totalorder %s1613_s28, 1 }
  0x14   : > { %p2124_p7 = por %p70_p3, %p69_p2  ;;  %p2128_p8 = por %p251_p4, %p63_p0 }
  0x15   : > { %p2132_p9 = por %p257_p6, %p69_p2  ;;  %p1614_p10 = scmp.ge.s32.totalorder %s2033_s26, 1 }
  0x16   : > { %s2964_s8 = scalar_select %p2128_p8, 1, 0 }
  0x17   : > { %s2966_s9 = scalar_select %p2132_p9, 1, 0 }
  0x18   : > { %2965 = sst [smem:[#allocation21_spill]] %s2964_s8  ;;  %p264_p11 = scmp.lt.s32.totalorder %s2033_s26, 3 }
  0x19   : > { %2967 = sst [smem:[#allocation22_spill]] %s2966_s9  ;;  %s2035_s14 = smov [#allocation9]  }
  0x1a   : > { %s2968_s3 = sld [smem:[#allocation26_spill]]  ;;  %p2141_p12 = pnand %p1614_p10, %p264_p11 }
  0x1b   : > { %s280_s15 = sshll.u32 %s2035_s14, 4  ;;  %p1618_p13 = scmp.ge.s32.totalorder %s2033_s26, 2  ;;  %s281_s15 = int_to_ptr.vmem [resolvable:$true] %s280_s15 }
  0x1c   : > { %p1710_p0 = pneg %p2141_p12  ;;  %p1733_p1 = scmp.lt.s32.totalorder %s2033_s26, 2 }
  0x1d   : > { %s45_s18 = sadd.s32 1, %s2029_s25  ;;  %s2165_s19 = sand.u32 1, %s2021_s23  }
  0x1e   : > { %p2151_p2 = pnand %p1710_p0, %p70_p3  ;;  %p2157_p4 = pnand %p1733_p1, %p2118_p5 }
  0x1f   : > { %p47_p6 = scmp.ge.s32.totalorder %s45_s18, 2  ;;  %s2170_s20 = sshll.u32 %s2029_s25, 8 }
  0x20   : > { %s278_s12 = sshll.u32 %s2968_s3, 4  ;;  %s337_s30 = sand.u32 1, %s2033_s26   ;;  %s279_s12 = int_to_ptr.hbm [resolvable:$true] %s278_s12 }
  0x21   : > { %1713 = dma.hbm_to_vmem [thread:$0]  (!%p2151_p2), %s279_s12, 64, %s281_s15, [#allocation10]  }
  0x22   : > { %s2987_s18 = smov (%p47_p6, %s45_s18), 0  ;;  %s1622_s10 = sshll.u32 %s2165_s19, 4 }
  0x23   : > { %2972 = sst [smem:[#allocation23_spill]] %s2987_s18  ;;  %s49_s28 = ssub.s32 %s2029_s25, %s2987_s18 }
  0x24   : > { %p54_p10 = scmp.eq.s32.totalorder %s49_s28, 0  ;;  %s2974_s1 = sld [smem:[#allocation25_spill]] }
  0x25   : > { %s341_s9 = scalar_lea.vmem [#allocation6], %s1622_s10  ;;  %s2185_s8 = scalar_lea.sflag [#allocation7], %s337_s30 }
  0x26   : > { %s2179_s11 = scalar_select %p54_p10, %s2021_s23, %s56_s29  }
  0x27   : > { %s356_s21 = sshll.u32 %s341_s9, 4  ;;  %s2036_s28 = smov 128   ;;  %s357_s21 = int_to_ptr.vmem [resolvable:$true] %s356_s21 }
  0x28   : > { %2973 = sst [smem:[#allocation24_spill]] %s2179_s11  ;;  %s2037_s18 = smov 8  }
  0x29   : > { %s2975_s4 = sld [smem:[#allocation27_spill]]  ;;  %s370_s14 = scalar_lea.vmem [#allocation8], %s1622_s10 }
  0x2a   : > { %s353_s12 = scalar_lea.hbm %s2974_s1, %s2170_s20  ;;  %s2038_s9 = smov [#allocation11]  }
  0x2b   : > { %s354_s15 = sshll.u32 %s353_s12, 4  ;;  %s385_s12 = sshll.u32 %s370_s14, 4  ;;  %s355_s15 = int_to_ptr.hbm [resolvable:$true] %s354_s15  ;;  %s386_s12 = int_to_ptr.vmem [resolvable:$true] %s385_s12 }
  0x2c   : > { %1723 = dma.hbm_to_vmem [thread:$0]  (!%p2157_p4), %s355_s15, 256, %s357_s21, %s2185_s8, %s2036_s28, %s2036_s28, %s2037_s18  }
  0x2d   : > { %s294_s1 = sshll.u32 %s2038_s9, 4  ;;  %s1619_s30 = sshll.u32 %s2165_s19, 8  ;;  %s295_s1 = int_to_ptr.vmem [resolvable:$true] %s294_s1 }
  0x2e   : > { %s324_s15 = scalar_lea.hbm %s2939_s0, %s2170_s20  ;;  %s315_s29 = scalar_lea.vmem [#allocation3], %s1619_s30 }
  0x2f   : > { %s292_s3 = sshll.u32 %s2975_s4, 4  ;;  %s325_s25 = sshll.u32 %s324_s15, 4  ;;  %s293_s3 = int_to_ptr.hbm [resolvable:$true] %s292_s3  ;;  %s326_s25 = int_to_ptr.hbm [resolvable:$true] %s325_s25 }
  0x30   : > { %1716 = dma.hbm_to_vmem [thread:$0]  (!%p2151_p2), %s293_s3, 64, %s295_s1, [#allocation10]  }
  0x31   : > { %s327_s4 = sshll.u32 %s315_s29, 4  ;;  %s312_s10 = scalar_lea.sflag [#allocation4], %s2165_s19  ;;  %s328_s4 = int_to_ptr.vmem [resolvable:$true] %s327_s4 }
  0x32   : > { %1720 = dma.hbm_to_vmem [thread:$0]  (!%p2157_p4), %s326_s25, 4096, %s328_s4, %s312_s10, %s2036_s28, %s2036_s28, %s2037_s18  }
  0x33   : > { %s1691_s14 = sadd.s32 240, %s2170_s20  ;;  %397 = sbr.rel (%p2141_p12) target bundleno = 210 (0xd2), region = 44 }
  0x34   : > { %s382_s26 = scalar_lea.hbm %s2941_s2, %s1691_s14  ;;  %s2213_s1 = sand.u32 (!%p2141_p12), 1, %s2017_s22  }
  0x35   : > { %s383_s16 = sshll.u32 %s382_s26, 4  ;;  %s1629_s4 = sshll.u32 (!%p2141_p12), %s2213_s1, 8  ;;  %s384_s16 = int_to_ptr.hbm [resolvable:$true] %s383_s16 }
  0x36   : > { %1726 = dma.hbm_to_vmem [thread:$0]  (!%p2157_p4), %s384_s16, 256, %s386_s12, %s2185_s8, %s2036_s28, %s2036_s28, %s2037_s18  }
  0x37   : > { %s400_s19 = scalar_lea.sflag (!%p2141_p12), [#allocation4], %s2213_s1  ;;  %s2219_s20 = scalar_lea.vmem (!%p2141_p12), [#allocation3], %s1629_s4 }
  0x38   : > { %1996 = dma.done.wait (%p2124_p7), %s400_s19, 4096  }
  0x39   : > { %1998 = vsyncadd (%p2124_p7), %s400_s19, 4294963200  ;;  %s409_s23 = sand.u32 1, %s2107_s27  }
  0x3a   : > { %s410_s26 = scalar_lea.sflag [#allocation7], %s409_s23 }
  0x3b   : > { %2000 = dma.done.wait (%p2124_p7), %s410_s26, 512  }
  0x3c   : > { %2002 = vsyncadd (%p2124_p7), %s410_s26, 4294966784 }
  0x3d   : > { %2004 = dma.done.wait (%p70_p3), [#allocation10], 128  }
  0x3e   : > { %2006 = vsyncadd (%p70_p3), [#allocation10], 4294967168  ;;  %v605_v0 = vlaneseq  ;;  %v489_v3 = vld [vmem:[#allocation9] sm:$0x7]  ;;  %v490_v4 = vld [vmem:[#allocation11] sm:$0x7] }
  0x3f   : > { %v589_v5 = vld [vmem:[%s2219_s20] sm:$0xff]  ;;  %v590_v6 = vld [vmem:[%s2219_s20 + $0x8] sm:$0xff]  ;;  %v2246_v7 = vld [vmem:[%s2219_s20 + $0x10] sm:$0xff]  ;;  %v2248_v8 = vperm.slane %v489_v3, 1  ;;  %v2250_v9 = vperm.slane %v489_v3, 0  ;;  %v2252_v10 = vperm.slane %v489_v3, 2 }
  0x40   : > { %v2234_v1 = vshrl.u32 %v605_v0, 7  ;;  %v2255_v11 = vld [vmem:[%s2219_s20 + $0x18] sm:$0xff]  ;;  %v625_v12 = vrot.slane %v589_v5, 7  ;;  %v626_v13 = vrot.slane %v2246_v7, 7  ;;  %v633_v14 = vrot.slane %v590_v6, 7  ;;  %v593_v53 = vld [vmem:[%s2219_s20 + $0x20] sm:$0xff] }
  0x41   : > { %v709_v15 = vrot.slane %v589_v5, 1  ;;  %v609_v16 = vmul.f32 %v2248_v8, %v589_v5  ;;  %v611_v17 = vmul.f32 %v2248_v8, %v2246_v7  ;;  %v634_v18 = vrot.slane %v2255_v11, 7  ;;  %v2266_v20 = vld [vmem:[%s2944_s5] ss:$0 sm:$0xff]  ;;  %v2313_v54 = vld [vmem:[%s2219_s20 + $0x28] sm:$0xff]  ;;  %s2341_s8 = scalar_lea.vmem [#allocation12], %s1629_s4 }
  0x42   : > { %v2237_v2 = vadd.s32 8, %v2234_v1  ;;  %vm641_vm0 = vcmp.lt.s32.totalorder %v2234_v1, 1  ;;  %vm658_vm1 = vcmp.ge.s32.totalorder %v2234_v1, 1  ;;  %vm725_vm2 = vcmp.lt.s32.totalorder %v2234_v1, 7  ;;  %s1692_s18 = sshll.u32 %s2025_s24, 8  ;;  %s1431_s3 = sshll.u32 %s2341_s8, 4  ;;  %s1432_s3 = int_to_ptr.vmem [resolvable:$true] %s1431_s3 }
  0x43   : > { %v710_v19 = vrot.slane %v2246_v7, 1  ;;  %v650_v21 = vsel %vm641_vm0, %v633_v14, %v625_v12  ;;  %v717_v22 = vrot.slane %v590_v6, 1  ;;  %v718_v23 = vrot.slane %v2255_v11, 1  ;;  %s1430_s28 = scalar_lea.hbm %s2945_s6, %s1692_s18  ;;  %s1415_s21 = scalar_lea.sflag [#allocation5], %s2213_s1 }
  0x44   : > { %vm743_vm3 = vcmp.lt.s32.totalorder %v2237_v2, 15  ;;  %v2271_v24 = vperm.slane %v490_v4, 0  ;;  %v651_v25 = vsel %vm641_vm0, %v634_v18, %v626_v13  ;;  %v660_v26 = vsel %vm658_vm1, %v650_v21, 0.0  ;;  %s1433_s12 = sshll.u32 %s1430_s28, 4  ;;  %s1963_s14 = scalar_lea.hbm %s2945_s6, 512  ;;  %s1434_s12 = int_to_ptr.hbm [resolvable:$true] %s1433_s12 }
  0x45   : > { %v1039_v27 = vmul.f32 %v2266_v20, %v589_v5  ;;  %v2278_v28 = vperm.slane %v490_v4, 1  ;;  %v662_v29 = vsel %vm658_vm1, %v651_v25, 0.0  ;;  %v677_v30 = vmul.f32 %v2250_v9, %v660_v26  ;;  %s1957_s15 = sshra.s32 %s1434_s12, 4  ;;  %s1958_s15 = int_to_ptr.hbm [resolvable:$true] %s1957_s15 }
  0x46   : > { %v726_v31 = vsel %vm725_vm2, %v709_v15, %v717_v22  ;;  %v727_v32 = vsel %vm725_vm2, %v710_v19, %v718_v23  ;;  %v679_v33 = vmul.f32 %v2250_v9, %v662_v29  ;;  %v1072_v36 = vmul.f32 0.0, %v2271_v24  ;;  %s1959_s25 = scalar_lea.hbm %s1958_s15, 256  ;;  %p1964_p11 = scmp.lt.s32.totalorder %s1958_s15, %s2945_s6 }
  0x47   : > { %v761_v34 = vmul.f32 %v2252_v10, %v726_v31  ;;  %v763_v35 = vmul.f32 %v2252_v10, %v727_v32  ;;  %v693_v37 = vadd.f32 %v677_v30, %v609_v16  ;;  %v2291_v38 = vperm.slane %v490_v4, 2  ;;  %p1960_p3 = scmp.ne.s32.totalorder %s1958_s15, %s1959_s25  ;;  %p1965_p12 = scmp.lt.s32.totalorder %s1963_s14, %s1959_s25 }
  0x48   : > { %v610_v39 = vmul.f32 %v2248_v8, %v590_v6  ;;  %v612_v40 = vmul.f32 %v2248_v8, %v2255_v11  ;;  %v695_v41 = vadd.f32 %v679_v33, %v611_v17  ;;  %v1088_v42 = vadd.f32 %v1072_v36, %v1039_v27 }
  0x49   : > { %v642_v43 = vsel %vm641_vm0, %v625_v12, %v633_v14  ;;  %v643_v44 = vsel %vm641_vm0, %v626_v13, %v634_v18  ;;  %v777_v45 = vadd.f32 %v761_v34, %v693_v37  ;;  %v734_v48 = vsel %vm725_vm2, %v717_v22, %v709_v15  ;;  %v2359_v37 = vld [vmem:[%s2219_s20 + $0x38] sm:$0xff]  ;;  %p1961_p5 = pnand %p1960_p3, %p2128_p8  ;;  %p1966_p0 = por %p1965_p12, %p1964_p11 }
  0x4a   : > { %v678_v46 = vmul.f32 %v2250_v9, %v642_v43  ;;  %v680_v47 = vmul.f32 %v2250_v9, %v643_v44  ;;  %v2304_v49 = vadd.f32 %v763_v35, %v695_v41  ;;  %v735_v50 = vsel %vm725_vm2, %v718_v23, %v710_v19 }
  0x4b   : > { %v745_v51 = vsel %vm743_vm3, %v734_v48, 0.0  ;;  %v1040_v52 = vmul.f32 %v2266_v20, %v590_v6  ;;  %v1121_v55 = vmul.f32 %v2278_v28, %v777_v45  ;;  %v747_v58 = vsel %vm743_vm3, %v735_v50, 0.0  ;;  %p1962_p7 = pneg %p1961_p5 }
  0x4c   : > { %v694_v56 = vadd.f32 %v678_v46, %v610_v39  ;;  %v696_v57 = vadd.f32 %v680_v47, %v612_v40  ;;  %v1171_v59 = vmul.f32 %v2291_v38, %v2304_v49  ;;  %v762_v60 = vmul.f32 %v2252_v10, %v745_v51 }
  0x4d   : > { %v764_v61 = vmul.f32 %v2252_v10, %v747_v58  ;;  %v1089_v62 = vadd.f32 %v1072_v36, %v1040_v52  ;;  %v1137_v63 = vadd.f32 %v1121_v55, %v1088_v42  ;;  %v613_v0 = vmul.f32 %v2248_v8, %v593_v53  ;;  %v595_v36 = vld [vmem:[%s2219_s20 + $0x30] sm:$0xff]  ;;  %p1967_p1 = pnand %p1966_p0, %p1962_p7 }
  0x4e   : > { %v627_v3 = vrot.slane %v593_v53, 7  ;;  %v635_v4 = vrot.slane %v2313_v54, 7  ;;  %v778_v5 = vadd.f32 %v762_v60, %v694_v56  ;;  %v711_v12 = vrot.slane %v593_v53, 1 }
  0x4f   : > { %v2324_v6 = vadd.f32 %v764_v61, %v696_v57  ;;  %v719_v13 = vrot.slane %v2313_v54, 1  ;;  %v1187_v14 = vadd.f32 %v1171_v59, %v1137_v63  ;;  %v1041_v16 = vmul.f32 %v2266_v20, %v2246_v7 }
  0x50   : > { %v652_v15 = vsel %vm641_vm0, %v635_v4, %v627_v3  ;;  %v1074_v17 = vmul.f32 %v2271_v24, %v777_v45  ;;  %v1122_v18 = vmul.f32 %v2278_v28, %v778_v5  ;;  %v1123_v26 = vmul.f32 %v2278_v28, %v2304_v49 }
  0x51   : > { %v1172_v19 = vmul.f32 %v2291_v38, %v2324_v6  ;;  %v664_v21 = vsel %vm658_vm1, %v652_v15, 0.0  ;;  %v728_v22 = vsel %vm725_vm2, %v711_v12, %v719_v13  ;;  %1203 = vst [vmem:[%s2341_s8] sm:$0xff] %v1187_v14  ;;  %v614_v29 = vmul.f32 %v2248_v8, %v2313_v54  ;;  %v597_v15 = vld [vmem:[%s2219_s20 + $0x40] sm:$0xff] }
  0x52   : > { %v681_v7 = vmul.f32 %v2250_v9, %v664_v21  ;;  %v765_v23 = vmul.f32 %v2252_v10, %v728_v22  ;;  %v1090_v25 = vadd.f32 %v1074_v17, %v1041_v16  ;;  %v1138_v27 = vadd.f32 %v1122_v18, %v1089_v62  ;;  %v2399_v16 = vld [vmem:[%s2219_s20 + $0x48] sm:$0xff] }
  0x53   : > { %v644_v30 = vsel %vm641_vm0, %v627_v3, %v635_v4  ;;  %v736_v31 = vsel %vm725_vm2, %v719_v13, %v711_v12  ;;  %v1042_v41 = vmul.f32 %v2266_v20, %v2255_v11  ;;  %v1075_v42 = vmul.f32 %v2271_v24, %v778_v5 }
  0x54   : > { %v697_v32 = vadd.f32 %v681_v7, %v613_v0  ;;  %v1139_v33 = vadd.f32 %v1123_v26, %v1090_v25  ;;  %v682_v34 = vmul.f32 %v2250_v9, %v644_v30  ;;  %v749_v35 = vsel %vm743_vm3, %v736_v31, 0.0 }
  0x55   : > { %v1188_v39 = vadd.f32 %v1172_v19, %v1138_v27  ;;  %v766_v40 = vmul.f32 %v2252_v10, %v749_v35  ;;  %v1124_v45 = vmul.f32 %v2278_v28, %v2324_v6  ;;  %v615_v46 = vmul.f32 %v2248_v8, %v595_v36 }
  0x56   : > { %v781_v43 = vadd.f32 %v765_v23, %v697_v32  ;;  %v698_v44 = vadd.f32 %v682_v34, %v614_v29  ;;  %v1091_v47 = vadd.f32 %v1075_v42, %v1042_v41  ;;  %v628_v48 = vrot.slane %v595_v36, 7 }
  0x57   : > { %1204 = vst [vmem:[%s2341_s8 + $0x8] sm:$0xff] %v1188_v39  ;;  %v636_v50 = vrot.slane %v2359_v37, 7  ;;  %v712_v51 = vrot.slane %v595_v36, 1  ;;  %v720_v11 = vrot.slane %v2359_v37, 1  ;;  %v1043_v56 = vmul.f32 %v2266_v20, %v593_v53 }
  0x58   : > { %v1173_v52 = vmul.f32 %v2291_v38, %v781_v43  ;;  %v2371_v55 = vadd.f32 %v766_v40, %v698_v44  ;;  %v1140_v57 = vadd.f32 %v1124_v45, %v1091_v47  ;;  %v1076_v59 = vmul.f32 %v2271_v24, %v2304_v49 }
  0x59   : > { %v653_v58 = vsel %vm641_vm0, %v636_v50, %v628_v48  ;;  %v1125_v60 = vmul.f32 %v2278_v28, %v781_v43  ;;  %v729_v53 = vsel %vm725_vm2, %v712_v51, %v720_v11  ;;  %v616_v49 = vmul.f32 %v2248_v8, %v2359_v37 }
  0x5a   : > { %v1189_v61 = vadd.f32 %v1173_v52, %v1139_v33  ;;  %v1174_v62 = vmul.f32 %v2291_v38, %v2371_v55  ;;  %v666_v63 = vsel %vm658_vm1, %v653_v58, 0.0  ;;  %v767_v3 = vmul.f32 %v2252_v10, %v729_v53  ;;  %v599_v58 = vld [vmem:[%s2219_s20 + $0x50] sm:$0xff] }
  0x5b   : > { %v683_v0 = vmul.f32 %v2250_v9, %v666_v63  ;;  %v1092_v4 = vadd.f32 %v1076_v59, %v1043_v56  ;;  %v645_v12 = vsel %vm641_vm0, %v628_v48, %v636_v50  ;;  %v737_v13 = vsel %vm725_vm2, %v720_v11, %v712_v51  ;;  %v2441_v59 = vld [vmem:[%s2219_s20 + $0x58] sm:$0xff] }
  0x5c   : > { %1205 = vst [vmem:[%s2341_s8 + $0x10] sm:$0xff] %v1189_v61  ;;  %v1190_v5 = vadd.f32 %v1174_v62, %v1140_v57  ;;  %v1044_v14 = vmul.f32 %v2266_v20, %v2313_v54  ;;  %v684_v19 = vmul.f32 %v2250_v9, %v645_v12  ;;  %v751_v21 = vsel %vm743_vm3, %v737_v13, 0.0 }
  0x5d   : > { %v699_v17 = vadd.f32 %v683_v0, %v615_v46  ;;  %v1141_v18 = vadd.f32 %v1125_v60, %v1092_v4  ;;  %v768_v22 = vmul.f32 %v2252_v10, %v751_v21  ;;  %v1077_v7 = vmul.f32 %v2271_v24, %v2324_v6 }
  0x5e   : > { %1206 = vst [vmem:[%s2341_s8 + $0x18] sm:$0xff] %v1190_v5  ;;  %v1126_v23 = vmul.f32 %v2278_v28, %v2371_v55  ;;  %v617_v54 = vmul.f32 %v2248_v8, %v597_v15  ;;  %v700_v26 = vadd.f32 %v684_v19, %v616_v49  ;;  %v629_v27 = vrot.slane %v597_v15, 7 }
  0x5f   : > { %v783_v25 = vadd.f32 %v767_v3, %v699_v17  ;;  %v637_v29 = vrot.slane %v2399_v16, 7  ;;  %v1093_v30 = vadd.f32 %v1077_v7, %v1044_v14  ;;  %v713_v31 = vrot.slane %v597_v15, 1 }
  0x60   : > { %v721_v32 = vrot.slane %v2399_v16, 1  ;;  %v1045_v33 = vmul.f32 %v2266_v20, %v595_v36  ;;  %v2415_v6 = vadd.f32 %v768_v22, %v700_v26  ;;  %v1078_v39 = vmul.f32 %v2271_v24, %v781_v43 }
  0x61   : > { %v1175_v34 = vmul.f32 %v2291_v38, %v783_v25  ;;  %v654_v35 = vsel %vm641_vm0, %v637_v29, %v629_v27  ;;  %v1142_v40 = vadd.f32 %v1126_v23, %v1093_v30  ;;  %v1127_v36 = vmul.f32 %v2278_v28, %v783_v25 }
  0x62   : > { %v668_v41 = vsel %vm658_vm1, %v654_v35, 0.0  ;;  %v730_v42 = vsel %vm725_vm2, %v713_v31, %v721_v32  ;;  %v1176_v45 = vmul.f32 %v2291_v38, %v2415_v6  ;;  %v1094_v43 = vadd.f32 %v1078_v39, %v1045_v33  ;;  %v2481_v35 = vld [vmem:[%s2219_s20 + $0x68] sm:$0xff] }
  0x63   : > { %v1191_v44 = vadd.f32 %v1175_v34, %v1141_v18  ;;  %v685_v46 = vmul.f32 %v2250_v9, %v668_v41  ;;  %v769_v47 = vmul.f32 %v2252_v10, %v730_v42  ;;  %v618_v48 = vmul.f32 %v2248_v8, %v2399_v16  ;;  %v601_v34 = vld [vmem:[%s2219_s20 + $0x60] sm:$0xff] }
  0x64   : > { %v646_v50 = vsel %vm641_vm0, %v629_v27, %v637_v29  ;;  %v738_v51 = vsel %vm725_vm2, %v721_v32, %v713_v31  ;;  %v1192_v52 = vadd.f32 %v1176_v45, %v1142_v40  ;;  %v1143_v60 = vadd.f32 %v1127_v36, %v1094_v43 }
  0x65   : > { %1207 = vst [vmem:[%s2341_s8 + $0x20] sm:$0xff] %v1191_v44  ;;  %v701_v11 = vadd.f32 %v685_v46, %v617_v54  ;;  %v686_v56 = vmul.f32 %v2250_v9, %v646_v50  ;;  %v753_v57 = vsel %vm743_vm3, %v738_v51, 0.0  ;;  %v1046_v62 = vmul.f32 %v2266_v20, %v2359_v37 }
  0x66   : > { %v770_v61 = vmul.f32 %v2252_v10, %v753_v57  ;;  %v1079_v63 = vmul.f32 %v2271_v24, %v2371_v55  ;;  %1208 = vst [vmem:[%s2341_s8 + $0x28] sm:$0xff] %v1192_v52  ;;  %v1128_v3 = vmul.f32 %v2278_v28, %v2415_v6  ;;  %v619_v4 = vmul.f32 %v2248_v8, %v599_v58 }
  0x67   : > { %v785_v53 = vadd.f32 %v769_v47, %v701_v11  ;;  %v702_v0 = vadd.f32 %v686_v56, %v618_v48  ;;  %v630_v5 = vrot.slane %v599_v58, 7  ;;  %v638_v12 = vrot.slane %v2441_v59, 7 }
  0x68   : > { %v1095_v49 = vadd.f32 %v1079_v63, %v1046_v62  ;;  %v714_v13 = vrot.slane %v599_v58, 1  ;;  %v722_v55 = vrot.slane %v2441_v59, 1  ;;  %v1047_v17 = vmul.f32 %v2266_v20, %v597_v15 }
  0x69   : > { %v1177_v14 = vmul.f32 %v2291_v38, %v785_v53  ;;  %v2454_v37 = vadd.f32 %v770_v61, %v702_v0  ;;  %v655_v19 = vsel %vm641_vm0, %v638_v12, %v630_v5  ;;  %v1080_v21 = vmul.f32 %v2271_v24, %v783_v25 }
  0x6a   : > { %v1144_v18 = vadd.f32 %v1128_v3, %v1095_v49  ;;  %v1129_v22 = vmul.f32 %v2278_v28, %v785_v53  ;;  %v670_v54 = vsel %vm658_vm1, %v655_v19, 0.0  ;;  %v731_v15 = vsel %vm725_vm2, %v714_v13, %v722_v55  ;;  %v603_v19 = vld [vmem:[%s2219_s20 + $0x70] sm:$0xff] }
  0x6b   : > { %v1193_v7 = vadd.f32 %v1177_v14, %v1143_v60  ;;  %v1178_v23 = vmul.f32 %v2291_v38, %v2454_v37  ;;  %v687_v26 = vmul.f32 %v2250_v9, %v670_v54  ;;  %v771_v27 = vmul.f32 %v2252_v10, %v731_v15 }
  0x6c   : > { %v1096_v29 = vadd.f32 %v1080_v21, %v1047_v17  ;;  %v620_v25 = vmul.f32 %v2248_v8, %v2441_v59  ;;  %v647_v31 = vsel %vm641_vm0, %v630_v5, %v638_v12  ;;  %v739_v32 = vsel %vm725_vm2, %v722_v55, %v714_v13  ;;  %v2523_v21 = vld [vmem:[%s2219_s20 + $0x78] sm:$0xff] }
  0x6d   : > { %1209 = vst [vmem:[%s2341_s8 + $0x30] sm:$0xff] %v1193_v7  ;;  %v1194_v30 = vadd.f32 %v1178_v23, %v1144_v18  ;;  %v1048_v33 = vmul.f32 %v2266_v20, %v2399_v16  ;;  %v703_v39 = vadd.f32 %v687_v26, %v619_v4  ;;  %v688_v41 = vmul.f32 %v2250_v9, %v647_v31 }
  0x6e   : > { %v1145_v40 = vadd.f32 %v1129_v22, %v1096_v29  ;;  %v755_v42 = vsel %vm743_vm3, %v739_v32, 0.0  ;;  %v1081_v44 = vmul.f32 %v2271_v24, %v2415_v6  ;;  %v1130_v45 = vmul.f32 %v2278_v28, %v2454_v37 }
  0x6f   : > { %1210 = vst [vmem:[%s2341_s8 + $0x38] sm:$0xff] %v1194_v30  ;;  %v772_v36 = vmul.f32 %v2252_v10, %v755_v42  ;;  %v621_v16 = vmul.f32 %v2248_v8, %v601_v34  ;;  %v787_v46 = vadd.f32 %v771_v27, %v703_v39  ;;  %v704_v47 = vadd.f32 %v688_v41, %v620_v25 }
  0x70   : > { %v631_v43 = vrot.slane %v601_v34, 7  ;;  %v639_v48 = vrot.slane %v2481_v35, 7  ;;  %v1097_v50 = vadd.f32 %v1081_v44, %v1048_v33  ;;  %v715_v51 = vrot.slane %v601_v34, 1 }
  0x71   : > { %v723_v52 = vrot.slane %v2481_v35, 1  ;;  %v1049_v11 = vmul.f32 %v2266_v20, %v599_v58  ;;  %v1179_v56 = vmul.f32 %v2291_v38, %v787_v46  ;;  %v2497_v6 = vadd.f32 %v772_v36, %v704_v47 }
  0x72   : > { %v656_v57 = vsel %vm641_vm0, %v639_v48, %v631_v43  ;;  %v1082_v60 = vmul.f32 %v2271_v24, %v785_v53  ;;  %v1146_v61 = vadd.f32 %v1130_v45, %v1097_v50  ;;  %v1131_v58 = vmul.f32 %v2278_v28, %v787_v46 }
  0x73   : > { %v672_v62 = vsel %vm658_vm1, %v656_v57, 0.0  ;;  %v732_v63 = vsel %vm725_vm2, %v715_v51, %v723_v52  ;;  %v1195_v0 = vadd.f32 %v1179_v56, %v1145_v40  ;;  %v1180_v3 = vmul.f32 %v2291_v38, %v2497_v6  ;;  %v1635_v56 = vld [vmem:[%s2219_s20 + $0x80] sm:$0xff]  ;;  %v2563_v57 = vld [vmem:[%s2219_s20 + $0x88] sm:$0xff] }
  0x74   : > { %v689_v4 = vmul.f32 %v2250_v9, %v672_v62  ;;  %v773_v49 = vmul.f32 %v2252_v10, %v732_v63  ;;  %v1098_v53 = vadd.f32 %v1082_v60, %v1049_v11  ;;  %v622_v5 = vmul.f32 %v2248_v8, %v2481_v35 }
  0x75   : > { %v648_v12 = vsel %vm641_vm0, %v631_v43, %v639_v48  ;;  %v740_v13 = vsel %vm725_vm2, %v723_v52, %v715_v51  ;;  %1211 = vst [vmem:[%s2341_s8 + $0x40] sm:$0xff] %v1195_v0  ;;  %v1196_v14 = vadd.f32 %v1180_v3, %v1146_v61  ;;  %v1050_v23 = vmul.f32 %v2266_v20, %v2441_v59 }
  0x76   : > { %v705_v55 = vadd.f32 %v689_v4, %v621_v16  ;;  %v690_v17 = vmul.f32 %v2250_v9, %v648_v12  ;;  %v757_v18 = vsel %vm743_vm3, %v740_v13, 0.0  ;;  %v1147_v22 = vadd.f32 %v1131_v58, %v1098_v53 }
  0x77   : > { %v774_v7 = vmul.f32 %v2252_v10, %v757_v18  ;;  %v1083_v54 = vmul.f32 %v2271_v24, %v2454_v37  ;;  %1212 = vst [vmem:[%s2341_s8 + $0x48] sm:$0xff] %v1196_v14  ;;  %v1132_v27 = vmul.f32 %v2278_v28, %v2497_v6  ;;  %v623_v29 = vmul.f32 %v2248_v8, %v603_v19 }
  0x78   : > { %v789_v15 = vadd.f32 %v773_v49, %v705_v55  ;;  %v706_v26 = vadd.f32 %v690_v17, %v622_v5  ;;  %v632_v30 = vrot.slane %v603_v19, 7  ;;  %v640_v31 = vrot.slane %v2523_v21, 7 }
  0x79   : > { %v1099_v25 = vadd.f32 %v1083_v54, %v1050_v23  ;;  %v716_v32 = vrot.slane %v603_v19, 1  ;;  %v724_v37 = vrot.slane %v2523_v21, 1  ;;  %v1051_v39 = vmul.f32 %v2266_v20, %v601_v34 }
  0x7a   : > { %v1181_v33 = vmul.f32 %v2291_v38, %v789_v15  ;;  %v2536_v59 = vadd.f32 %v774_v7, %v706_v26  ;;  %v657_v41 = vsel %vm641_vm0, %v640_v31, %v632_v30  ;;  %v1084_v42 = vmul.f32 %v2271_v24, %v787_v46 }
  0x7b   : > { %v1148_v40 = vadd.f32 %v1132_v27, %v1099_v25  ;;  %v1133_v36 = vmul.f32 %v2278_v28, %v789_v15  ;;  %v674_v16 = vsel %vm658_vm1, %v657_v41, 0.0  ;;  %v733_v34 = vsel %vm725_vm2, %v716_v32, %v724_v37  ;;  %v1637_v41 = vld [vmem:[%s2219_s20 + $0x90] sm:$0xff] }
  0x7c   : > { %v1197_v44 = vadd.f32 %v1181_v33, %v1147_v22  ;;  %v1182_v45 = vmul.f32 %v2291_v38, %v2536_v59  ;;  %v691_v47 = vmul.f32 %v2250_v9, %v674_v16  ;;  %v775_v43 = vmul.f32 %v2252_v10, %v733_v34 }
  0x7d   : > { %v1100_v48 = vadd.f32 %v1084_v42, %v1051_v39  ;;  %v624_v46 = vmul.f32 %v2248_v8, %v2523_v21  ;;  %v649_v51 = vsel %vm641_vm0, %v632_v30, %v640_v31  ;;  %v741_v52 = vsel %vm725_vm2, %v724_v37, %v716_v32  ;;  %v2605_v42 = vld [vmem:[%s2219_s20 + $0x98] sm:$0xff] }
  0x7e   : > { %1213 = vst [vmem:[%s2341_s8 + $0x50] sm:$0xff] %v1197_v44  ;;  %v1198_v50 = vadd.f32 %v1182_v45, %v1148_v40  ;;  %v1052_v11 = vmul.f32 %v2266_v20, %v2481_v35  ;;  %v707_v60 = vadd.f32 %v691_v47, %v623_v29  ;;  %v692_v62 = vmul.f32 %v2250_v9, %v649_v51 }
  0x7f   : > { %v1149_v61 = vadd.f32 %v1133_v36, %v1100_v48  ;;  %v759_v63 = vsel %vm743_vm3, %v741_v52, 0.0  ;;  %v1085_v0 = vmul.f32 %v2271_v24, %v2497_v6  ;;  %v1134_v3 = vmul.f32 %v2278_v28, %v2536_v59 }
  0x80   : > { %1214 = vst [vmem:[%s2341_s8 + $0x58] sm:$0xff] %v1198_v50  ;;  %v776_v58 = vmul.f32 %v2252_v10, %v759_v63  ;;  %v827_v35 = vmul.f32 %v1635_v56, %v2248_v8  ;;  %v791_v4 = vadd.f32 %v775_v43, %v707_v60  ;;  %v708_v49 = vadd.f32 %v692_v62, %v624_v46 }
  0x81   : > { %v843_v53 = vrot.slane %v1635_v56, 7  ;;  %v851_v5 = vrot.slane %v2563_v57, 7  ;;  %v1101_v12 = vadd.f32 %v1085_v0, %v1052_v11  ;;  %v923_v13 = vrot.slane %v1635_v56, 1 }
  0x82   : > { %v931_v14 = vrot.slane %v2563_v57, 1  ;;  %v1053_v55 = vmul.f32 %v2266_v20, %v603_v19  ;;  %v1183_v17 = vmul.f32 %v2291_v38, %v791_v4  ;;  %v2579_v6 = vadd.f32 %v776_v58, %v708_v49 }
  0x83   : > { %v867_v18 = vsel %vm641_vm0, %v851_v5, %v843_v53  ;;  %v1086_v22 = vmul.f32 %v2271_v24, %v789_v15  ;;  %v1150_v7 = vadd.f32 %v1134_v3, %v1101_v12  ;;  %v1135_v19 = vmul.f32 %v2278_v28, %v791_v4 }
  0x84   : > { %v875_v23 = vsel %vm658_vm1, %v867_v18, 0.0  ;;  %v939_v54 = vsel %vm725_vm2, %v923_v13, %v931_v14  ;;  %v1199_v26 = vadd.f32 %v1183_v17, %v1149_v61  ;;  %v1184_v27 = vmul.f32 %v2291_v38, %v2579_v6  ;;  %v1639_v17 = vld [vmem:[%s2219_s20 + $0xa0] sm:$0xff]  ;;  %v2645_v18 = vld [vmem:[%s2219_s20 + $0xa8] sm:$0xff] }
  0x85   : > { %v891_v29 = vmul.f32 %v875_v23, %v2250_v9  ;;  %v971_v25 = vmul.f32 %v939_v54, %v2252_v10  ;;  %v1102_v15 = vadd.f32 %v1086_v22, %v1053_v55  ;;  %v828_v30 = vmul.f32 %v2563_v57, %v2248_v8 }
  0x86   : > { %v859_v31 = vsel %vm641_vm0, %v843_v53, %v851_v5  ;;  %v947_v32 = vsel %vm725_vm2, %v931_v14, %v923_v13  ;;  %1215 = vst [vmem:[%s2341_s8 + $0x60] sm:$0xff] %v1199_v26  ;;  %v1200_v33 = vadd.f32 %v1184_v27, %v1150_v7  ;;  %v1054_v45 = vmul.f32 %v2266_v20, %v2523_v21 }
  0x87   : > { %v907_v37 = vadd.f32 %v891_v29, %v827_v35  ;;  %v892_v39 = vmul.f32 %v859_v31, %v2250_v9  ;;  %v956_v40 = vsel %vm743_vm3, %v947_v32, 0.0  ;;  %v1151_v36 = vadd.f32 %v1135_v19, %v1102_v15 }
  0x88   : > { %v972_v44 = vmul.f32 %v956_v40, %v2252_v10  ;;  %v1087_v16 = vmul.f32 %v2271_v24, %v2536_v59  ;;  %1216 = vst [vmem:[%s2341_s8 + $0x68] sm:$0xff] %v1200_v33  ;;  %v1136_v43 = vmul.f32 %v2278_v28, %v2579_v6  ;;  %v829_v48 = vmul.f32 %v1637_v41, %v2248_v8 }
  0x89   : > { %v987_v34 = vadd.f32 %v971_v25, %v907_v37  ;;  %v908_v47 = vadd.f32 %v892_v39, %v828_v30  ;;  %v844_v50 = vrot.slane %v1637_v41, 7  ;;  %v852_v51 = vrot.slane %v2605_v42, 7 }
  0x8a   : > { %v1103_v46 = vadd.f32 %v1087_v16, %v1054_v45  ;;  %v924_v52 = vrot.slane %v1637_v41, 1  ;;  %v932_v59 = vrot.slane %v2605_v42, 1  ;;  %v1235_v60 = vmul.f32 %v2266_v20, %v1635_v56 }
  0x8b   : > { %v1185_v11 = vmul.f32 %v2291_v38, %v987_v34  ;;  %v2618_v21 = vadd.f32 %v972_v44, %v908_v47  ;;  %v868_v62 = vsel %vm641_vm0, %v852_v51, %v844_v50  ;;  %v1268_v63 = vmul.f32 %v2271_v24, %v791_v4 }
  0x8c   : > { %v1152_v61 = vadd.f32 %v1136_v43, %v1103_v46  ;;  %v1316_v58 = vmul.f32 %v2278_v28, %v987_v34  ;;  %v877_v35 = vsel %vm658_vm1, %v868_v62, 0.0  ;;  %v940_v56 = vsel %vm725_vm2, %v924_v52, %v932_v59  ;;  %v1641_v62 = vld [vmem:[%s2219_s20 + $0xb0] sm:$0xff] }
  0x8d   : > { %v1201_v0 = vadd.f32 %v1185_v11, %v1151_v36  ;;  %v1186_v3 = vmul.f32 %v2291_v38, %v2618_v21  ;;  %v893_v49 = vmul.f32 %v877_v35, %v2250_v9  ;;  %v973_v53 = vmul.f32 %v940_v56, %v2252_v10 }
  0x8e   : > { %v1284_v5 = vadd.f32 %v1268_v63, %v1235_v60  ;;  %v830_v4 = vmul.f32 %v2605_v42, %v2248_v8  ;;  %v860_v13 = vsel %vm641_vm0, %v844_v50, %v852_v51  ;;  %v948_v14 = vsel %vm725_vm2, %v932_v59, %v924_v52  ;;  %v2687_v63 = vld [vmem:[%s2219_s20 + $0xb8] sm:$0xff] }
  0x8f   : > { %1217 = vst [vmem:[%s2341_s8 + $0x70] sm:$0xff] %v1201_v0  ;;  %v1202_v12 = vadd.f32 %v1186_v3, %v1152_v61  ;;  %v1236_v55 = vmul.f32 %v2266_v20, %v2563_v57  ;;  %v909_v22 = vadd.f32 %v893_v49, %v829_v48  ;;  %v894_v23 = vmul.f32 %v860_v13, %v2250_v9 }
  0x90   : > { %v1332_v7 = vadd.f32 %v1316_v58, %v1284_v5  ;;  %v958_v54 = vsel %vm743_vm3, %v948_v14, 0.0  ;;  %v1269_v26 = vmul.f32 %v2271_v24, %v2579_v6  ;;  %v1317_v27 = vmul.f32 %v2278_v28, %v2618_v21 }
  0x91   : > { %1218 = vst [vmem:[%s2341_s8 + $0x78] sm:$0xff] %v1202_v12  ;;  %v974_v19 = vmul.f32 %v958_v54, %v2252_v10  ;;  %v831_v57 = vmul.f32 %v1639_v17, %v2248_v8  ;;  %v989_v29 = vadd.f32 %v973_v53, %v909_v22  ;;  %v910_v25 = vadd.f32 %v894_v23, %v830_v4 }
  0x92   : > { %v845_v15 = vrot.slane %v1639_v17, 7  ;;  %v853_v30 = vrot.slane %v2645_v18, 7  ;;  %v1285_v31 = vadd.f32 %v1269_v26, %v1236_v55  ;;  %v925_v32 = vrot.slane %v1639_v17, 1 }
  0x93   : > { %v933_v33 = vrot.slane %v2645_v18, 1  ;;  %v1237_v37 = vmul.f32 %v2266_v20, %v1637_v41  ;;  %v1365_v39 = vmul.f32 %v2291_v38, %v989_v29  ;;  %v2661_v6 = vadd.f32 %v974_v19, %v910_v25 }
  0x94   : > { %v869_v40 = vsel %vm641_vm0, %v853_v30, %v845_v15  ;;  %v1270_v36 = vmul.f32 %v2271_v24, %v987_v34  ;;  %v1333_v44 = vadd.f32 %v1317_v27, %v1285_v31  ;;  %v1318_v41 = vmul.f32 %v2278_v28, %v989_v29 }
  0x95   : > { %v879_v45 = vsel %vm658_vm1, %v869_v40, 0.0  ;;  %v941_v16 = vsel %vm725_vm2, %v925_v32, %v933_v33  ;;  %v1381_v47 = vadd.f32 %v1365_v39, %v1332_v7  ;;  %v1366_v43 = vmul.f32 %v2291_v38, %v2661_v6  ;;  %v1643_v39 = vld [vmem:[%s2219_s20 + $0xc0] sm:$0xff]  ;;  %v2727_v40 = vld [vmem:[%s2219_s20 + $0xc8] sm:$0xff] }
  0x96   : > { %v895_v48 = vmul.f32 %v879_v45, %v2250_v9  ;;  %v975_v46 = vmul.f32 %v941_v16, %v2252_v10  ;;  %v1286_v34 = vadd.f32 %v1270_v36, %v1237_v37  ;;  %v832_v50 = vmul.f32 %v2645_v18, %v2248_v8 }
  0x97   : > { %v861_v51 = vsel %vm641_vm0, %v845_v15, %v853_v30  ;;  %v949_v52 = vsel %vm725_vm2, %v933_v33, %v925_v32  ;;  %1667 = vst [vmem:[%s2341_s8 + $0x80] sm:$0xff] %v1381_v47  ;;  %v1382_v11 = vadd.f32 %v1366_v43, %v1333_v44  ;;  %v1238_v3 = vmul.f32 %v2266_v20, %v2605_v42 }
  0x98   : > { %v911_v59 = vadd.f32 %v895_v48, %v831_v57  ;;  %v896_v60 = vmul.f32 %v861_v51, %v2250_v9  ;;  %v960_v61 = vsel %vm743_vm3, %v949_v52, 0.0  ;;  %v1334_v58 = vadd.f32 %v1318_v41, %v1286_v34 }
  0x99   : > { %v976_v0 = vmul.f32 %v960_v61, %v2252_v10  ;;  %v1271_v35 = vmul.f32 %v2271_v24, %v2618_v21  ;;  %1668 = vst [vmem:[%s2341_s8 + $0x88] sm:$0xff] %v1382_v11  ;;  %v1319_v53 = vmul.f32 %v2278_v28, %v2661_v6  ;;  %v833_v5 = vmul.f32 %v1641_v62, %v2248_v8 }
  0x9a   : > { %v991_v56 = vadd.f32 %v975_v46, %v911_v59  ;;  %v912_v49 = vadd.f32 %v896_v60, %v832_v50  ;;  %v846_v12 = vrot.slane %v1641_v62, 7  ;;  %v854_v13 = vrot.slane %v2687_v63, 7 }
  0x9b   : > { %v1287_v4 = vadd.f32 %v1271_v35, %v1238_v3  ;;  %v926_v14 = vrot.slane %v1641_v62, 1  ;;  %v934_v21 = vrot.slane %v2687_v63, 1  ;;  %v1239_v22 = vmul.f32 %v2266_v20, %v1639_v17 }
  0x9c   : > { %v1367_v55 = vmul.f32 %v2291_v38, %v991_v56  ;;  %v2700_v42 = vadd.f32 %v976_v0, %v912_v49  ;;  %v870_v23 = vsel %vm641_vm0, %v854_v13, %v846_v12  ;;  %v1272_v54 = vmul.f32 %v2271_v24, %v989_v29 }
  0x9d   : > { %v1335_v7 = vadd.f32 %v1319_v53, %v1287_v4  ;;  %v1320_v19 = vmul.f32 %v2278_v28, %v991_v56  ;;  %v881_v57 = vsel %vm658_vm1, %v870_v23, 0.0  ;;  %v942_v17 = vsel %vm725_vm2, %v926_v14, %v934_v21  ;;  %v1645_v23 = vld [vmem:[%s2219_s20 + $0xd0] sm:$0xff] }
  0x9e   : > { %v1383_v26 = vadd.f32 %v1367_v55, %v1334_v58  ;;  %v1368_v27 = vmul.f32 %v2291_v38, %v2700_v42  ;;  %v897_v25 = vmul.f32 %v881_v57, %v2250_v9  ;;  %v977_v15 = vmul.f32 %v942_v17, %v2252_v10 }
  0x9f   : > { %v1288_v30 = vadd.f32 %v1272_v54, %v1239_v22  ;;  %v834_v29 = vmul.f32 %v2687_v63, %v2248_v8  ;;  %v862_v32 = vsel %vm641_vm0, %v846_v12, %v854_v13  ;;  %v950_v33 = vsel %vm725_vm2, %v934_v21, %v926_v14  ;;  %v2769_v54 = vld [vmem:[%s2219_s20 + $0xd8] sm:$0xff] }
  0xa0   : > { %1669 = vst [vmem:[%s2341_s8 + $0x90] sm:$0xff] %v1383_v26  ;;  %v1384_v31 = vadd.f32 %v1368_v27, %v1335_v7  ;;  %v1240_v37 = vmul.f32 %v2266_v20, %v2645_v18  ;;  %v913_v36 = vadd.f32 %v897_v25, %v833_v5  ;;  %v898_v45 = vmul.f32 %v862_v32, %v2250_v9 }
  0xa1   : > { %v1336_v44 = vadd.f32 %v1320_v19, %v1288_v30  ;;  %v962_v16 = vsel %vm743_vm3, %v950_v33, 0.0  ;;  %v1273_v47 = vmul.f32 %v2271_v24, %v2661_v6  ;;  %v1321_v43 = vmul.f32 %v2278_v28, %v2700_v42 }
  0xa2   : > { %1670 = vst [vmem:[%s2341_s8 + $0x98] sm:$0xff] %v1384_v31  ;;  %v978_v41 = vmul.f32 %v962_v16, %v2252_v10  ;;  %v835_v18 = vmul.f32 %v1643_v39, %v2248_v8  ;;  %v993_v48 = vadd.f32 %v977_v15, %v913_v36  ;;  %v914_v46 = vadd.f32 %v898_v45, %v834_v29 }
  0xa3   : > { %v847_v34 = vrot.slane %v1643_v39, 7  ;;  %v855_v50 = vrot.slane %v2727_v40, 7  ;;  %v1289_v51 = vadd.f32 %v1273_v47, %v1240_v37  ;;  %v927_v52 = vrot.slane %v1643_v39, 1 }
  0xa4   : > { %v935_v11 = vrot.slane %v2727_v40, 1  ;;  %v1241_v59 = vmul.f32 %v2266_v20, %v1641_v62  ;;  %v1369_v60 = vmul.f32 %v2291_v38, %v993_v48  ;;  %v2743_v6 = vadd.f32 %v978_v41, %v914_v46 }
  0xa5   : > { %v871_v61 = vsel %vm641_vm0, %v855_v50, %v847_v34  ;;  %v1274_v58 = vmul.f32 %v2271_v24, %v991_v56  ;;  %v1337_v0 = vadd.f32 %v1321_v43, %v1289_v51  ;;  %v1322_v62 = vmul.f32 %v2278_v28, %v993_v48 }
  0xa6   : > { %v883_v3 = vsel %vm658_vm1, %v871_v61, 0.0  ;;  %v943_v35 = vsel %vm725_vm2, %v927_v52, %v935_v11  ;;  %v1385_v49 = vadd.f32 %v1369_v60, %v1336_v44  ;;  %v1370_v53 = vmul.f32 %v2291_v38, %v2743_v6  ;;  %v1647_v60 = vld [vmem:[%s2219_s20 + $0xe0] sm:$0xff]  ;;  %v2809_v61 = vld [vmem:[%s2219_s20 + $0xe8] sm:$0xff] }
  0xa7   : > { %v899_v5 = vmul.f32 %v883_v3, %v2250_v9  ;;  %v979_v4 = vmul.f32 %v943_v35, %v2252_v10  ;;  %v1290_v56 = vadd.f32 %v1274_v58, %v1241_v59  ;;  %v836_v12 = vmul.f32 %v2727_v40, %v2248_v8 }
  0xa8   : > { %v863_v13 = vsel %vm641_vm0, %v847_v34, %v855_v50  ;;  %v951_v14 = vsel %vm725_vm2, %v935_v11, %v927_v52  ;;  %1671 = vst [vmem:[%s2341_s8 + $0xa0] sm:$0xff] %v1385_v49  ;;  %v1386_v55 = vadd.f32 %v1370_v53, %v1337_v0  ;;  %v1242_v27 = vmul.f32 %v2266_v20, %v2687_v63 }
  0xa9   : > { %v915_v21 = vadd.f32 %v899_v5, %v835_v18  ;;  %v900_v22 = vmul.f32 %v863_v13, %v2250_v9  ;;  %v964_v7 = vsel %vm743_vm3, %v951_v14, 0.0  ;;  %v1338_v19 = vadd.f32 %v1322_v62, %v1290_v56 }
  0xaa   : > { %v980_v26 = vmul.f32 %v964_v7, %v2252_v10  ;;  %v1275_v57 = vmul.f32 %v2271_v24, %v2700_v42  ;;  %1672 = vst [vmem:[%s2341_s8 + $0xa8] sm:$0xff] %v1386_v55  ;;  %v1323_v15 = vmul.f32 %v2278_v28, %v2743_v6  ;;  %v837_v30 = vmul.f32 %v1645_v23, %v2248_v8 }
  0xab   : > { %v995_v17 = vadd.f32 %v979_v4, %v915_v21  ;;  %v916_v25 = vadd.f32 %v900_v22, %v836_v12  ;;  %v848_v31 = vrot.slane %v1645_v23, 7  ;;  %v856_v32 = vrot.slane %v2769_v54, 7 }
  0xac   : > { %v1291_v29 = vadd.f32 %v1275_v57, %v1242_v27  ;;  %v928_v33 = vrot.slane %v1645_v23, 1  ;;  %v936_v42 = vrot.slane %v2769_v54, 1  ;;  %v1243_v36 = vmul.f32 %v2266_v20, %v1643_v39 }
  0xad   : > { %v1371_v37 = vmul.f32 %v2291_v38, %v995_v17  ;;  %v2782_v63 = vadd.f32 %v980_v26, %v916_v25  ;;  %v872_v45 = vsel %vm641_vm0, %v856_v32, %v848_v31  ;;  %v1276_v16 = vmul.f32 %v2271_v24, %v993_v48 }
  0xae   : > { %v1339_v44 = vadd.f32 %v1323_v15, %v1291_v29  ;;  %v1324_v41 = vmul.f32 %v2278_v28, %v995_v17  ;;  %v885_v18 = vsel %vm658_vm1, %v872_v45, 0.0  ;;  %v944_v39 = vsel %vm725_vm2, %v928_v33, %v936_v42  ;;  %v1650_v45 = vld [vmem:[%s2219_s20 + $0xf8] sm:$0xff] }
  0xaf   : > { %v1387_v47 = vadd.f32 %v1371_v37, %v1338_v19  ;;  %v1372_v43 = vmul.f32 %v2291_v38, %v2782_v63  ;;  %v901_v46 = vmul.f32 %v885_v18, %v2250_v9  ;;  %v981_v34 = vmul.f32 %v944_v39, %v2252_v10 }
  0xb0   : > { %v1292_v50 = vadd.f32 %v1276_v16, %v1243_v36  ;;  %v838_v48 = vmul.f32 %v2769_v54, %v2248_v8  ;;  %v864_v52 = vsel %vm641_vm0, %v848_v31, %v856_v32  ;;  %v952_v11 = vsel %vm725_vm2, %v936_v42, %v928_v33 }
  0xb1   : > { %1673 = vst [vmem:[%s2341_s8 + $0xb0] sm:$0xff] %v1387_v47  ;;  %v1388_v51 = vadd.f32 %v1372_v43, %v1339_v44  ;;  %v1244_v59 = vmul.f32 %v2266_v20, %v2727_v40  ;;  %v917_v58 = vadd.f32 %v901_v46, %v837_v30  ;;  %v902_v3 = vmul.f32 %v864_v52, %v2250_v9  ;;  %v1649_v44 = vld [vmem:[%s2219_s20 + $0xf0] sm:$0xff]  ;;  %v1792_v47 = vld [vmem:[%s2944_s5] ss:$0 sm:$0xff] }
  0xb2   : > { %v1340_v0 = vadd.f32 %v1324_v41, %v1292_v50  ;;  %v966_v35 = vsel %vm743_vm3, %v952_v11, 0.0  ;;  %v1277_v49 = vmul.f32 %v2271_v24, %v2743_v6  ;;  %v1325_v53 = vmul.f32 %v2278_v28, %v2782_v63 }
  0xb3   : > { %1674 = vst [vmem:[%s2341_s8 + $0xb8] sm:$0xff] %v1388_v51  ;;  %v982_v62 = vmul.f32 %v966_v35, %v2252_v10  ;;  %v839_v40 = vmul.f32 %v1647_v60, %v2248_v8  ;;  %v997_v5 = vadd.f32 %v981_v34, %v917_v58  ;;  %v918_v4 = vadd.f32 %v902_v3, %v838_v48 }
  0xb4   : > { %v849_v56 = vrot.slane %v1647_v60, 7  ;;  %v857_v12 = vrot.slane %v2809_v61, 7  ;;  %v1293_v13 = vadd.f32 %v1277_v49, %v1244_v59  ;;  %v929_v14 = vrot.slane %v1647_v60, 1 }
  0xb5   : > { %v937_v55 = vrot.slane %v2809_v61, 1  ;;  %v1245_v21 = vmul.f32 %v2266_v20, %v1645_v23  ;;  %v1373_v22 = vmul.f32 %v2291_v38, %v997_v5  ;;  %v2825_v6 = vadd.f32 %v982_v62, %v918_v4 }
  0xb6   : > { %v873_v7 = vsel %vm641_vm0, %v857_v12, %v849_v56  ;;  %v1278_v19 = vmul.f32 %v2271_v24, %v995_v17  ;;  %v1341_v26 = vadd.f32 %v1325_v53, %v1293_v13  ;;  %v1326_v20 = vmul.f32 %v2278_v28, %v997_v5 }
  0xb7   : > { %v887_v27 = vsel %vm658_vm1, %v873_v7, 0.0  ;;  %v945_v57 = vsel %vm725_vm2, %v929_v14, %v937_v55  ;;  %v1389_v23 = vadd.f32 %v1373_v22, %v1340_v0  ;;  %v1374_v25 = vmul.f32 %v2291_v38, %v2825_v6 }
  0xb8   : > { %v903_v15 = vmul.f32 %v887_v27, %v2250_v9  ;;  %v983_v30 = vmul.f32 %v945_v57, %v2252_v10  ;;  %v1294_v17 = vadd.f32 %v1278_v19, %v1245_v21  ;;  %v840_v29 = vmul.f32 %v2809_v61, %v2248_v8 }
  0xb9   : > { %v865_v31 = vsel %vm641_vm0, %v849_v56, %v857_v12  ;;  %v953_v32 = vsel %vm725_vm2, %v937_v55, %v929_v14  ;;  %1675 = vst [vmem:[%s2341_s8 + $0xc0] sm:$0xff] %v1389_v23  ;;  %v1390_v33 = vadd.f32 %v1374_v25, %v1341_v26  ;;  %v1246_v43 = vmul.f32 %v1792_v47, %v2769_v54 }
  0xba   : > { %v919_v37 = vadd.f32 %v903_v15, %v839_v40  ;;  %v904_v42 = vmul.f32 %v865_v31, %v2250_v9  ;;  %v968_v36 = vsel %vm743_vm3, %v953_v32, 0.0  ;;  %v1342_v16 = vadd.f32 %v1326_v20, %v1294_v17 }
  0xbb   : > { %v984_v41 = vmul.f32 %v968_v36, %v2252_v10  ;;  %v1279_v18 = vmul.f32 %v2271_v24, %v2782_v63  ;;  %1676 = vst [vmem:[%s2341_s8 + $0xc8] sm:$0xff] %v1390_v33  ;;  %v1327_v34 = vmul.f32 %v2278_v28, %v2825_v6  ;;  %v841_v50 = vmul.f32 %v1649_v44, %v2248_v8 }
  0xbc   : > { %v999_v39 = vadd.f32 %v983_v30, %v919_v37  ;;  %v920_v46 = vadd.f32 %v904_v42, %v840_v29  ;;  %v850_v51 = vrot.slane %v1649_v44, 7  ;;  %v858_v52 = vrot.slane %v1650_v45, 7 }
  0xbd   : > { %v1295_v48 = vadd.f32 %v1279_v18, %v1246_v43  ;;  %v930_v11 = vrot.slane %v1649_v44, 1  ;;  %v938_v54 = vrot.slane %v1650_v45, 1  ;;  %v1247_v0 = vmul.f32 %v1792_v47, %v1647_v60 }
  0xbe   : > { %v1375_v59 = vmul.f32 %v2291_v38, %v999_v39  ;;  %v1000_v58 = vadd.f32 %v984_v41, %v920_v46  ;;  %v874_v63 = vsel %vm641_vm0, %v858_v52, %v850_v51  ;;  %v1280_v35 = vmul.f32 %v2271_v24, %v997_v5 }
  0xbf   : > { %v1343_v3 = vadd.f32 %v1327_v34, %v1295_v48  ;;  %v1328_v62 = vmul.f32 %v2278_v28, %v999_v39  ;;  %v889_v40 = vsel %vm658_vm1, %v874_v63, 0.0  ;;  %v946_v4 = vsel %vm725_vm2, %v930_v11, %v938_v54 }
  0xc0   : > { %v1391_v49 = vadd.f32 %v1375_v59, %v1342_v16  ;;  %v1376_v53 = vmul.f32 %v2291_v38, %v1000_v58  ;;  %v905_v60 = vmul.f32 %v889_v40, %v2250_v9  ;;  %v985_v56 = vmul.f32 %v946_v4, %v2252_v10 }
  0xc1   : > { %v1296_v12 = vadd.f32 %v1280_v35, %v1247_v0  ;;  %v842_v5 = vmul.f32 %v1650_v45, %v2248_v8  ;;  %v866_v14 = vsel %vm641_vm0, %v850_v51, %v858_v52  ;;  %v954_v55 = vsel %vm725_vm2, %v938_v54, %v930_v11 }
  0xc2   : > { %1677 = vst [vmem:[%s2341_s8 + $0xd0] sm:$0xff] %v1391_v49  ;;  %v1392_v13 = vadd.f32 %v1376_v53, %v1343_v3  ;;  %v1248_v21 = vmul.f32 %v1792_v47, %v2809_v61  ;;  %v921_v22 = vadd.f32 %v905_v60, %v841_v50  ;;  %v906_v7 = vmul.f32 %v866_v14, %v2250_v9 }
  0xc3   : > { %v970_v19 = vsel %vm743_vm3, %v954_v55, 0.0  ;;  %v1281_v26 = vmul.f32 %v2271_v24, %v2825_v6  ;;  %v1329_v27 = vmul.f32 %v2278_v28, %v1000_v58  ;;  %v1249_v57 = vmul.f32 %v1792_v47, %v1649_v44 }
  0xc4   : > { %1678 = vst [vmem:[%s2341_s8 + $0xd8] sm:$0xff] %v1392_v13  ;;  %v986_v8 = vmul.f32 %v970_v19, %v2252_v10  ;;  %v1001_v1 = vadd.f32 %v985_v56, %v921_v22  ;;  %v1344_v20 = vadd.f32 %v1328_v62, %v1296_v12  ;;  %v922_v23 = vadd.f32 %v906_v7, %v842_v5 }
  0xc5   : > { %v1282_v61 = vmul.f32 %v2271_v24, %v999_v39  ;;  %v1297_v9 = vadd.f32 %v1281_v26, %v1248_v21  ;;  %v1379_v2 = vmul.f32 0.0, %v2291_v38  ;;  %v1250_v25 = vmul.f32 %v1792_v47, %v1650_v45 }
  0xc6   : > { %v1283_v15 = vmul.f32 %v2271_v24, %v1000_v58  ;;  %v1377_v10 = vmul.f32 %v2291_v38, %v1001_v1  ;;  %v1002_v6 = vadd.f32 %v986_v8, %v922_v23  ;;  %v1330_v17 = vmul.f32 %v2278_v28, %v1001_v1 }
  0xc7   : > { %v1298_v30 = vadd.f32 %v1282_v61, %v1249_v57  ;;  %v1345_v29 = vadd.f32 %v1329_v27, %v1297_v9 }
  0xc8   : > { %v1299_v31 = vadd.f32 %v1283_v15, %v1250_v25  ;;  %v1393_v32 = vadd.f32 %v1377_v10, %v1344_v20  ;;  %v1378_v33 = vmul.f32 %v2291_v38, %v1002_v6  ;;  %v1331_v37 = vmul.f32 %v2278_v28, %v1002_v6 }
  0xc9   : > { %v1346_v24 = vadd.f32 %v1330_v17, %v1298_v30 }
  0xca   : > { %1679 = vst [vmem:[%s2341_s8 + $0xe0] sm:$0xff] %v1393_v32  ;;  %v1394_v42 = vadd.f32 %v1378_v33, %v1345_v29  ;;  %v1347_v44 = vadd.f32 %v1331_v37, %v1299_v31 }
  0xcb   : > { %v1395_v36 = vadd.f32 %v1379_v2, %v1346_v24 }
  0xcc   : > { %1680 = vst [vmem:[%s2341_s8 + $0xe8] sm:$0xff] %v1394_v42  ;;  %v1396_v45 = vadd.f32 %v1379_v2, %v1347_v44 }
  0xcd   : > { %1681 = vst [vmem:[%s2341_s8 + $0xf0] sm:$0xff] %v1395_v36 }
  0xce   : > { %1682 = vst [vmem:[%s2341_s8 + $0xf8] sm:$0xff] %v1396_v45 }
  0xcf   : > { %1970 = shalt.err (!%p1967_p1)
}
  0xd0   : > { %s2039_s1 = smov 128   ;;  %s2040_s4 = smov 8  }
  0xd1   : > { %1708 = dma.vmem_to_hbm [thread:$0]  (%p2128_p8), %s1432_s3, 4096, %s1434_s12, %s1415_s21, %s2039_s1, %s2039_s1, %s2040_s4  }
  0xd2 PF: > { %s2977_s19 = sld [smem:[#allocation17_spill]]  ;;  %p1728_p2 = pnand %p1618_p13, %p2132_p9 }
  0xd3   : > { %s2979_s23 = sld [smem:[#allocation20_spill]] }
  0xd4   : > { %p1729_p4 = pneg %p1728_p2 }
  0xd8   : > { %s1448_s26 = sand.u32 1, %s2977_s19  }
  0xd9   : > { %s1449_s27 = scalar_lea.sflag [#allocation5], %s1448_s26 }
  0xda   : > { %2008 = dma.done.wait (%p1729_p4), %s1449_s27, 4096  }
  0xdb   : > { %2010 = vsyncadd (%p1729_p4), %s1449_s27, 4294963200  ;;  %s26_s26 = sadd.s32 1, %s2979_s23   ;;  %s2980_s7 = sld [smem:[#allocation18_spill]] }
  0xdc   : > { %p23_p6 = scmp.ge.s32.totalorder %s26_s26, 4   ;;  %s2981_s23 = sld [smem:[#allocation24_spill]] }
  0xdd   : > { %s2982_s24 = sld [smem:[#allocation19_spill]]  ;;  %s2984_s21 = smov %s2017_s22 }
  0xde   : > { %s2983_s25 = sld [smem:[#allocation23_spill]]  ;;  %25 = sbr.rel (!%p23_p6) target bundleno = 13 (0xd), region = 151 }
  0xe1   : > { %s2985_s22 = smov %s2980_s7 }
  0xe3   :  { %1455 = vsyncpa [#allocation4], 1 }
  0xe4   :  { %1457 = vsyncpa [#allocation4 + $0x1], 1 }
  0xe5   :  { %1458 = vsyncpa [#allocation7], 1 }
  0xe6   :  { %1460 = vsyncpa [#allocation7 + $0x1], 1 }
  0xe7   :  { %1461 = vsyncpa [#allocation10], 1 }
  0xe8   :  { %1462 = vsyncpa [#allocation5], 1 }
  0xe9   :  { %1464 = vsyncpa [#allocation5 + $0x1], 1 }

</bundles_post_ra>
